<compile_context>
chip_gen: v7x
topology: tpu7x:2x2x1
jax: 0.10.0
libtpu: 0.0.40
codegen_flags: <defaults>
</compile_context>

<pallas_src>
import functools
import numpy as np

import jax
import jax.numpy as jnp
from jax import lax
from jax.experimental import pallas as pl
from jax.experimental.pallas import tpu as pltpu

PAD = 0            # Constants.PAD
NEG_BIG = 1e9      # stands in for -inf in masked_fill (identical after softmax)
LN_EPS = 1e-5      # torch.nn.LayerNorm default eps


# ----------------------------------------------------------------------------
# Pallas kernel: full encoder layer stack.  grid = (batch_block_idx, layer_idx)
# ----------------------------------------------------------------------------
def encoder_stack_kernel(
    x_ref, keypad_ref, nonpad_ref,
    wq_ref, bq_ref, wk_ref, bk_ref, wv_ref, bv_ref,
    wo_ref, bo_ref, ln1g_ref, ln1b_ref,
    w1_ref, b1_ref, w2_ref, b2_ref, ln2g_ref, ln2b_ref,
    out_ref,
    *, n_head, d_k, d_v):
    layer = pl.program_id(1)
    Bb, L, D = x_ref.shape
    BL = Bb * L
    H = n_head

    # Seed the VMEM-resident carry (out_ref block persists across the layer axis).
    @pl.when(layer == 0)
    def _():
        out_ref[...] = x_ref[...]

    x = out_ref[...].reshape(BL, D)                 # (Bb*L, D) f32, features on lanes
    nonpad = nonpad_ref[...].reshape(BL, 1)         # (Bb*L, 1)
    # key-pad bias, broadcast ONCE over the head axis: (Bb,1,L) -> (H*Bb,1,L)
    mask_bias = jnp.tile(keypad_ref[...] * NEG_BIG, (H, 1, 1))

    def layer_norm(v, g, b):
        mean = jnp.mean(v, axis=-1, keepdims=True)
        var = jnp.mean((v - mean) ** 2, axis=-1, keepdims=True)
        return (v - mean) * lax.rsqrt(var + LN_EPS) * g + b

    # ---------------- multi-head self-attention ----------------
    residual = x
    # head axis as leading batch dim: one broadcast, then batched matmuls
    xh = jnp.broadcast_to(x.astype(jnp.bfloat16)[None], (H, BL, D))

    # 1/sqrt(d_k) is pre-folded into wq/bq at parameter-prep time.
    q = jnp.einsum('hnd,hdk->hnk', xh, wq_ref[0],
                   preferred_element_type=jnp.float32) + bq_ref[0]
    k = jnp.einsum('hnd,hdk->hnk', xh, wk_ref[0],
                   preferred_element_type=jnp.float32) + bk_ref[0]
    v = jnp.einsum('hnd,hdk->hnk', xh, wv_ref[0],
                   preferred_element_type=jnp.float32) + bv_ref[0]
    q = q.astype(jnp.bfloat16).reshape(H * Bb, L, d_k)
    k = k.astype(jnp.bfloat16).reshape(H * Bb, L, d_k)
    v = v.astype(jnp.bfloat16).reshape(H * Bb, L, d_v)

    # scores / softmax over keys (batched over head*batch)
    s = jnp.einsum('nqd,nkd->nqk', q, k, preferred_element_type=jnp.float32)
    s = s - mask_bias
    s = s - jnp.max(s, axis=-1, keepdims=True)
    e = jnp.exp(s)
    p = e * pl.reciprocal(jnp.sum(e, axis=-1, keepdims=True), approx=True)

    ctx = jnp.einsum('nqk,nkd->nqd', p.astype(jnp.bfloat16), v,
                     preferred_element_type=jnp.float32)      # (H*Bb, L, d_v)
    ctx = ctx.astype(jnp.bfloat16).reshape(H, BL, d_v)
    # concat(heads) @ Wo  ==  sum_h ctx_h @ Wo_h  (no lane concat, no transpose)
    attn = jnp.einsum('hnd,hdo->hno', ctx, wo_ref[0],
                      preferred_element_type=jnp.float32)     # (H, BL, D)
    attn = jnp.sum(attn, axis=0) + bo_ref[0]                  # (BL, D)

    attn = layer_norm(attn + residual, ln1g_ref[0], ln1b_ref[0])
    attn = attn * nonpad                                      # enc_output *= non_pad_mask

    # ---------------- position-wise feed forward ----------------
    h1 = jnp.maximum(jnp.dot(attn.astype(jnp.bfloat16), w1_ref[0],
                             preferred_element_type=jnp.float32) + b1_ref[0], 0.0)
    h2 = jnp.dot(h1.astype(jnp.bfloat16), w2_ref[0],
                 preferred_element_type=jnp.float32) + b2_ref[0]
    out = layer_norm(h2 + attn, ln2g_ref[0], ln2b_ref[0])
    out = out * nonpad                                        # enc_output *= non_pad_mask

    out_ref[...] = out.reshape(Bb, L, D)                      # carry to next layer


# ----------------------------------------------------------------------------
# pallas_call wrapper for the whole encoder stack
# ----------------------------------------------------------------------------
def encoder_stack_pallas(x, keypad, nonpad, stacked, *, n_head, d_k, d_v,
                         batch_block=None):
    B, L, D = x.shape
    n_layers = stacked["wq"].shape[0]
    d_inner = stacked["w1"].shape[2]
    if batch_block is None:
        # two batch blocks when possible -> the "parallel" axis can use v7x's 2 TCs
        batch_block = B // 2 if (B % 2 == 0 and B >= 2) else B
    assert B % batch_block == 0
    n_bblk = B // batch_block

    def data_spec(shape):
        return pl.BlockSpec(shape, lambda b, l, _n=len(shape) - 1: (b,) + (0,) * _n)

    def layer_spec(shape):
        return pl.BlockSpec((1,) + shape, lambda b, l, _n=len(shape): (l,) + (0,) * _n)

    # VMEM budget: double-buffered per-layer weight stream + activation working set.
    per_layer_w_bytes = sum(int(v.size) * v.dtype.itemsize
                            for v in stacked.values()) // n_layers
    act_bytes = batch_block * L * max(D, d_inner) * 4
    vmem_limit = int(min(64 << 20,
                         max(32 << 20, 3 * per_layer_w_bytes + 32 * act_bytes + (4 << 20))))

    # TODO(synk): for very large d_inner, tile w1/w2 over d_inner (extra grid axis)
    #             so double-buffered FFN weights fit v7x's 64 MiB VMEM.
    # TODO(synk): lane-dense repacking of the (BL, D) slab for d_model < 128 (v5e
    #             store path) is not implemented; ~D/128 lane utilization until then.
    kernel = functools.partial(encoder_stack_kernel, n_head=n_head, d_k=d_k, d_v=d_v)
    return pl.pallas_call(
        kernel,
        out_shape=jax.ShapeDtypeStruct((B, L, D), jnp.float32),
        grid=(n_bblk, n_layers),
        in_specs=[
            data_spec((batch_block, L, D)),          # x (read only at layer 0)
            data_spec((batch_block, 1, L)),          # key pad mask
            data_spec((batch_block, L, 1)),          # non pad mask
            layer_spec((n_head, D, d_k)),  layer_spec((n_head, 1, d_k)),   # wq, bq
            layer_spec((n_head, D, d_k)),  layer_spec((n_head, 1, d_k)),   # wk, bk
            layer_spec((n_head, D, d_v)),  layer_spec((n_head, 1, d_v)),   # wv, bv
            layer_spec((n_head, d_v, D)),  layer_spec((1, D)),             # wo, bo
            layer_spec((1, D)),            layer_spec((1, D)),             # ln1 g/b
            layer_spec((D, d_inner)),      layer_spec((1, d_inner)),       # w1, b1
            layer_spec((d_inner, D)),      layer_spec((1, D)),             # w2, b2
            layer_spec((1, D)),            layer_spec((1, D)),             # ln2 g/b
        ],
        out_specs=pl.BlockSpec((batch_block, L, D), lambda b, l: (b, 0, 0)),
        compiler_params=pltpu.CompilerParams(
            dimension_semantics=("parallel", "arbitrary"),   # batch || , layer = carried loop
            vmem_limit_bytes=vmem_limit),
    )(x, keypad, nonpad,
      stacked["wq"], stacked["bq"], stacked["wk"], stacked["bk"],
      stacked["wv"], stacked["bv"], stacked["wo"], stacked["bo"],
      stacked["ln1_g"], stacked["ln1_b"],
      stacked["w1"], stacked["b1"], stacked["w2"], stacked["b2"],
      stacked["ln2_g"], stacked["ln2_b"])


# ----------------------------------------------------------------------------
# Plain-JAX glue: sinusoid table, parameter init, ONE-TIME parameter preparation
# ----------------------------------------------------------------------------
def get_sinusoid_encoding_table(n_position, d_hid, padding_idx=None):
    position = np.arange(n_position)[:, None].astype(np.float64)
    hid = np.arange(d_hid)[None, :]
    angle = position / np.power(10000, 2 * (hid // 2) / d_hid)
    table = np.zeros((n_position, d_hid), dtype=np.float64)
    table[:, 0::2] = np.sin(angle[:, 0::2])
    table[:, 1::2] = np.cos(angle[:, 1::2])
    if padding_idx is not None:
        table[padding_idx] = 0.0
    return jnp.asarray(table, dtype=jnp.float32)


def init_encoder_layer_params(key, d_model, d_inner, n_head, d_k, d_v):
    ks = jax.random.split(key, 10)

    def lin(k, fan_in, fan_out):
        return (jax.random.normal(k, (fan_in, fan_out), jnp.float32)
                * np.float32(1.0 / np.sqrt(fan_in)))

    def bias(k, n):
        return jax.random.normal(k, (1, n), jnp.float32) * 0.01

    return {
        "wq": lin(ks[0], d_model, n_head * d_k), "bq": bias(ks[1], n_head * d_k),
        "wk": lin(ks[2], d_model, n_head * d_k), "bk": bias(ks[3], n_head * d_k),
        "wv": lin(ks[4], d_model, n_head * d_v), "bv": bias(ks[5], n_head * d_v),
        "wo": lin(ks[6], n_head * d_v, d_model), "bo": bias(ks[7], d_model),
        "ln1_g": jnp.ones((1, d_model), jnp.float32),
        "ln1_b": jnp.zeros((1, d_model), jnp.float32),
        "w1": lin(ks[8], d_model, d_inner), "b1": jnp.zeros((1, d_inner), jnp.float32),
        "w2": lin(ks[9], d_inner, d_model), "b2": jnp.zeros((1, d_model), jnp.float32),
        "ln2_g": jnp.ones((1, d_model), jnp.float32),
        "ln2_b": jnp.zeros((1, d_model), jnp.float32),
    }


def prepare_encoder_params(layer_stack, input_id, *, n_head, d_k, d_v):
    """ONE-TIME (per parameter update) weight preparation — NOT on the forward path.
    Selects sub-layer `input_id`, reorganizes projections per head (head-leading),
    folds 1/sqrt(d_k) into the Q projection, casts matmul weights to bf16 and stacks
    all layers along a leading layer axis for the kernel's layer grid."""
    inv_temp = np.float32(1.0 / np.sqrt(d_k))

    def prep(p):
        D = p["wq"].shape[0]

        def w_heads(w, dh):                       # (D, H*dh) -> (H, D, dh)
            return jnp.transpose(w.reshape(D, n_head, dh), (1, 0, 2))

        def b_heads(b, dh):                       # (1, H*dh) -> (H, 1, dh)
            return b.reshape(n_head, dh)[:, None, :]

        return {
            "wq": (w_heads(p["wq"], d_k) * inv_temp).astype(jnp.bfloat16),
            "bq": b_heads(p["bq"], d_k) * inv_temp,
            "wk": w_heads(p["wk"], d_k).astype(jnp.bfloat16),
            "bk": b_heads(p["bk"], d_k),
            "wv": w_heads(p["wv"], d_v).astype(jnp.bfloat16),
            "bv": b_heads(p["bv"], d_v),
            "wo": p["wo"].reshape(n_head, d_v, D).astype(jnp.bfloat16),
            "bo": p["bo"],
            "ln1_g": p["ln1_g"], "ln1_b": p["ln1_b"],
            "w1": p["w1"].astype(jnp.bfloat16), "b1": p["b1"],
            "w2": p["w2"].astype(jnp.bfloat16), "b2": p["b2"],
            "ln2_g": p["ln2_g"], "ln2_b": p["ln2_b"],
        }

    prepped = [prep(pair[input_id]) for pair in layer_stack]
    return {k: jnp.stack([f[k] for f in prepped], axis=0) for k in prepped[0]}


def encoder_forward(src_seq, src_pos, stacked, emb_table, pos_table,
                    *, n_head, d_k, d_v):
    # get_attn_key_pad_mask: (B, 1, L) — 1.0 where the key is PAD (broadcast over queries)
    keypad = (src_seq == PAD).astype(jnp.float32)[:, None, :]
    # get_non_pad_mask: (B, L, 1)
    nonpad = (src_seq != PAD).astype(jnp.float32)[:, :, None]
    # embedding + positional encoding (glue: gather lookups)
    x = emb_table[src_seq] + pos_table[src_pos]
    out = encoder_stack_pallas(x, keypad, nonpad, stacked,
                               n_head=n_head, d_k=d_k, d_v=d_v)
    return (out,)


# ----------------------------------------------------------------------------
if __name__ == "__main__":
    # small config consistent with the module's __init__
    B, L = 2, 8
    d_model = 32          # emb_dim == d_model (required by residuals)
    d_inner = 64
    n_head, d_k, d_v = 4, 8, 8
    n_src_vocab = 50
    n_enc_layers = 2
    share_enc = 1
    n_position = 300

    key = jax.random.PRNGKey(0)
    k_seq, k_emb, key = jax.random.split(key, 3)

    # src_seq with some PAD tokens; src_pos = 1..L for real tokens, 0 for PAD
    src_seq = jax.random.randint(k_seq, (B, L), 1, n_src_vocab)
    src_seq = src_seq.at[1, -2:].set(PAD)
    src_pos = jnp.where(src_seq != PAD, jnp.arange(1, L + 1)[None, :], 0)

    # word embedding (padding_idx row zeroed) + frozen sinusoid position table
    # TODO(synk): pretrained-embedding pickle loading (init_embedding) is skipped.
    emb_table = jax.random.normal(k_emb, (n_src_vocab, d_model), jnp.float32) * 0.1
    emb_table = emb_table.at[PAD].set(0.0)
    pos_table = get_sinusoid_encoding_table(n_position, d_model, padding_idx=0)

    # layer_stack[k] is a pair of EncoderLayers; the second is shared (same params)
    # iff k >= n_enc_layers - share_enc, mirroring the PyTorch init.
    layer_stack = []
    for k in range(n_enc_layers):
        k0, k1, key = jax.random.split(key, 3)
        p0 = init_encoder_layer_params(k0, d_model, d_inner, n_head, d_k, d_v)
        p1 = p0 if k >= n_enc_layers - share_enc else \
            init_encoder_layer_params(k1, d_model, d_inner, n_head, d_k, d_v)
        layer_stack.append((p0, p1))

    # Weight prep is hoisted OUT of the forward path: done once per parameter set.
    prepared_by_id = {
        i: prepare_encoder_params(layer_stack, i, n_head=n_head, d_k=d_k, d_v=d_v)
        for i in (0, 1)
    }

    input_id = 0
    (enc_output,) = encoder_forward(src_seq, src_pos, prepared_by_id[input_id],
                                    emb_table, pos_table,
                                    n_head=n_head, d_k=d_k, d_v=d_v)
    jax.block_until_ready(enc_output)
    assert enc_output.shape == (B, L, d_model)
    assert bool(jnp.all(jnp.isfinite(enc_output)))
    print("KERNEL_OK")
</pallas_src>

<mosaic_0001>
module attributes {stable_mosaic.version = 11 : i64} {
  func.func @encoder_stack_kernel(%arg0: i32, %arg1: i32, %arg2: memref<1x8x32xf32, #tpu.memory_space<vmem>>, %arg3: memref<1x1x8xf32, #tpu.memory_space<vmem>>, %arg4: memref<1x8x1xf32, #tpu.memory_space<vmem>>, %arg5: memref<1x4x32x8xbf16, #tpu.memory_space<vmem>>, %arg6: memref<1x4x1x8xf32, #tpu.memory_space<vmem>>, %arg7: memref<1x4x32x8xbf16, #tpu.memory_space<vmem>>, %arg8: memref<1x4x1x8xf32, #tpu.memory_space<vmem>>, %arg9: memref<1x4x32x8xbf16, #tpu.memory_space<vmem>>, %arg10: memref<1x4x1x8xf32, #tpu.memory_space<vmem>>, %arg11: memref<1x4x8x32xbf16, #tpu.memory_space<vmem>>, %arg12: memref<1x1x32xf32, #tpu.memory_space<vmem>>, %arg13: memref<1x1x32xf32, #tpu.memory_space<vmem>>, %arg14: memref<1x1x32xf32, #tpu.memory_space<vmem>>, %arg15: memref<1x32x64xbf16, #tpu.memory_space<vmem>>, %arg16: memref<1x1x64xf32, #tpu.memory_space<vmem>>, %arg17: memref<1x64x32xbf16, #tpu.memory_space<vmem>>, %arg18: memref<1x1x32xf32, #tpu.memory_space<vmem>>, %arg19: memref<1x1x32xf32, #tpu.memory_space<vmem>>, %arg20: memref<1x1x32xf32, #tpu.memory_space<vmem>>, %arg21: memref<1x8x32xf32, #tpu.memory_space<vmem>>) attributes {dimension_semantics = [#tpu.dimension_semantics<parallel>, #tpu.dimension_semantics<arbitrary>], iteration_bounds = array<i64: 2, 2>, scalar_prefetch = 0 : i64, scratch_operands = 0 : i64, tpu.core_type = #tpu.core_type<tc>, window_params = [{transform_indices = @transform_0, window_bounds = array<i64: 1, 8, 32>}, {transform_indices = @transform_1, window_bounds = array<i64: 1, 1, 8>}, {transform_indices = @transform_2, window_bounds = array<i64: 1, 8, 1>}, {transform_indices = @transform_3, window_bounds = array<i64: 1, 4, 32, 8>}, {transform_indices = @transform_4, window_bounds = array<i64: 1, 4, 1, 8>}, {transform_indices = @transform_5, window_bounds = array<i64: 1, 4, 32, 8>}, {transform_indices = @transform_6, window_bounds = array<i64: 1, 4, 1, 8>}, {transform_indices = @transform_7, window_bounds = array<i64: 1, 4, 32, 8>}, {transform_indices = @transform_8, window_bounds = array<i64: 1, 4, 1, 8>}, {transform_indices = @transform_9, window_bounds = array<i64: 1, 4, 8, 32>}, {transform_indices = @transform_10, window_bounds = array<i64: 1, 1, 32>}, {transform_indices = @transform_11, window_bounds = array<i64: 1, 1, 32>}, {transform_indices = @transform_12, window_bounds = array<i64: 1, 1, 32>}, {transform_indices = @transform_13, window_bounds = array<i64: 1, 32, 64>}, {transform_indices = @transform_14, window_bounds = array<i64: 1, 1, 64>}, {transform_indices = @transform_15, window_bounds = array<i64: 1, 64, 32>}, {transform_indices = @transform_16, window_bounds = array<i64: 1, 1, 32>}, {transform_indices = @transform_17, window_bounds = array<i64: 1, 1, 32>}, {transform_indices = @transform_18, window_bounds = array<i64: 1, 1, 32>}, {transform_indices = @transform_19, window_bounds = array<i64: 1, 8, 32>}]} {
    %c0_i32 = arith.constant 0 : i32
    %0 = arith.cmpi eq, %arg1, %c0_i32 : i32
    %1 = arith.extui %0 : i1 to i32
    %c0_i32_0 = arith.constant 0 : i32
    %2 = arith.cmpi ne, %1, %c0_i32_0 : i32
    scf.if %2 {
      %c0_89 = arith.constant 0 : index
      %c0_90 = arith.constant 0 : index
      %c0_91 = arith.constant 0 : index
      %141 = vector.load %arg2[%c0_89, %c0_90, %c0_91] : memref<1x8x32xf32, #tpu.memory_space<vmem>>, vector<1x8x32xf32>
      %c0_92 = arith.constant 0 : index
      %c0_93 = arith.constant 0 : index
      %c0_94 = arith.constant 0 : index
      %142 = vector.load %arg21[%c0_92, %c0_93, %c0_94] : memref<1x8x32xf32, #tpu.memory_space<vmem>>, vector<1x8x32xf32>
      tpu.vector_store %arg21[%c0_92, %c0_93, %c0_94], %141 {strides = array<i32>} : memref<1x8x32xf32, #tpu.memory_space<vmem>>, vector<1x8x32xf32>,
    } else {
    }
    %c0 = arith.constant 0 : index
    %c0_1 = arith.constant 0 : index
    %c0_2 = arith.constant 0 : index
    %3 = vector.load %arg21[%c0, %c0_1, %c0_2] : memref<1x8x32xf32, #tpu.memory_space<vmem>>, vector<1x8x32xf32>
    %4 = vector.shape_cast %3 : vector<1x8x32xf32> to vector<8x32xf32>
    %c0_3 = arith.constant 0 : index
    %c0_4 = arith.constant 0 : index
    %c0_5 = arith.constant 0 : index
    %5 = vector.load %arg4[%c0_3, %c0_4, %c0_5] : memref<1x8x1xf32, #tpu.memory_space<vmem>>, vector<1x8x1xf32>
    %6 = vector.shape_cast %5 : vector<1x8x1xf32> to vector<8x1xf32>
    %c0_6 = arith.constant 0 : index
    %c0_7 = arith.constant 0 : index
    %c0_8 = arith.constant 0 : index
    %7 = vector.load %arg3[%c0_6, %c0_7, %c0_8] : memref<1x1x8xf32, #tpu.memory_space<vmem>>, vector<1x1x8xf32>
    %cst = arith.constant 1.000000e+09 : f32
    %8 = vector.broadcast %cst : f32 to vector<1x1x8xf32>
    %9 = arith.mulf %7, %8 : vector<1x1x8xf32>
    %10 = tpu.concatenate %9, %9, %9, %9 in 0 : vector<1x1x8xf32>, vector<1x1x8xf32>, vector<1x1x8xf32>, vector<1x1x8xf32> -> vector<4x1x8xf32>
    %11 = arith.truncf %4 : vector<8x32xf32> to vector<8x32xbf16>
    %12 = vector.shape_cast %11 : vector<8x32xbf16> to vector<1x8x32xbf16>
    %13 = vector.shape_cast %12 : vector<1x8x32xbf16> to vector<1x8x32xbf16>
    %14 = vector.broadcast %13 : vector<1x8x32xbf16> to vector<4x8x32xbf16>
    %c0_9 = arith.constant 0 : index
    %c0_10 = arith.constant 0 : index
    %c0_11 = arith.constant 0 : index
    %c0_12 = arith.constant 0 : index
    %15 = vector.load %arg5[%c0_9, %c0_10, %c0_11, %c0_12] : memref<1x4x32x8xbf16, #tpu.memory_space<vmem>>, vector<1x4x32x8xbf16>
    %16 = vector.shape_cast %15 : vector<1x4x32x8xbf16> to vector<4x32x8xbf16>
    "tpu.trace_start"() <{level = 10 : i32, message = "hnd,hdk->hnk"}> : () -> ()
    %cst_13 = arith.constant dense<0.000000e+00> : vector<4x8x8xf32>
    %17 = tpu.matmul %14, %16, %cst_13 {dimension_numbers = #tpu.dot_dimension_numbers<[2], [1], [1], [2], [0, 0, 0, 1, 1, 2], [0], [0]>} : vector<4x8x32xbf16>, vector<4x32x8xbf16>, vector<4x8x8xf32> -> vector<4x8x8xf32>
    "tpu.trace_stop"() : () -> ()
    %c0_14 = arith.constant 0 : index
    %c0_15 = arith.constant 0 : index
    %c0_16 = arith.constant 0 : index
    %c0_17 = arith.constant 0 : index
    %18 = vector.load %arg6[%c0_14, %c0_15, %c0_16, %c0_17] : memref<1x4x1x8xf32, #tpu.memory_space<vmem>>, vector<1x4x1x8xf32>
    %19 = vector.shape_cast %18 : vector<1x4x1x8xf32> to vector<4x1x8xf32>
    %20 = vector.broadcast %19 : vector<4x1x8xf32> to vector<4x8x8xf32>
    %21 = arith.addf %17, %20 : vector<4x8x8xf32>
    %c0_18 = arith.constant 0 : index
    %c0_19 = arith.constant 0 : index
    %c0_20 = arith.constant 0 : index
    %c0_21 = arith.constant 0 : index
    %22 = vector.load %arg7[%c0_18, %c0_19, %c0_20, %c0_21] : memref<1x4x32x8xbf16, #tpu.memory_space<vmem>>, vector<1x4x32x8xbf16>
    %23 = vector.shape_cast %22 : vector<1x4x32x8xbf16> to vector<4x32x8xbf16>
    "tpu.trace_start"() <{level = 10 : i32, message = "hnd,hdk->hnk"}> : () -> ()
    %cst_22 = arith.constant dense<0.000000e+00> : vector<4x8x8xf32>
    %24 = tpu.matmul %14, %23, %cst_22 {dimension_numbers = #tpu.dot_dimension_numbers<[2], [1], [1], [2], [0, 0, 0, 1, 1, 2], [0], [0]>} : vector<4x8x32xbf16>, vector<4x32x8xbf16>, vector<4x8x8xf32> -> vector<4x8x8xf32>
    "tpu.trace_stop"() : () -> ()
    %c0_23 = arith.constant 0 : index
    %c0_24 = arith.constant 0 : index
    %c0_25 = arith.constant 0 : index
    %c0_26 = arith.constant 0 : index
    %25 = vector.load %arg8[%c0_23, %c0_24, %c0_25, %c0_26] : memref<1x4x1x8xf32, #tpu.memory_space<vmem>>, vector<1x4x1x8xf32>
    %26 = vector.shape_cast %25 : vector<1x4x1x8xf32> to vector<4x1x8xf32>
    %27 = vector.broadcast %26 : vector<4x1x8xf32> to vector<4x8x8xf32>
    %28 = arith.addf %24, %27 : vector<4x8x8xf32>
    %c0_27 = arith.constant 0 : index
    %c0_28 = arith.constant 0 : index
    %c0_29 = arith.constant 0 : index
    %c0_30 = arith.constant 0 : index
    %29 = vector.load %arg9[%c0_27, %c0_28, %c0_29, %c0_30] : memref<1x4x32x8xbf16, #tpu.memory_space<vmem>>, vector<1x4x32x8xbf16>
    %30 = vector.shape_cast %29 : vector<1x4x32x8xbf16> to vector<4x32x8xbf16>
    "tpu.trace_start"() <{level = 10 : i32, message = "hnd,hdk->hnk"}> : () -> ()
    %cst_31 = arith.constant dense<0.000000e+00> : vector<4x8x8xf32>
    %31 = tpu.matmul %14, %30, %cst_31 {dimension_numbers = #tpu.dot_dimension_numbers<[2], [1], [1], [2], [0, 0, 0, 1, 1, 2], [0], [0]>} : vector<4x8x32xbf16>, vector<4x32x8xbf16>, vector<4x8x8xf32> -> vector<4x8x8xf32>
    "tpu.trace_stop"() : () -> ()
    %c0_32 = arith.constant 0 : index
    %c0_33 = arith.constant 0 : index
    %c0_34 = arith.constant 0 : index
    %c0_35 = arith.constant 0 : index
    %32 = vector.load %arg10[%c0_32, %c0_33, %c0_34, %c0_35] : memref<1x4x1x8xf32, #tpu.memory_space<vmem>>, vector<1x4x1x8xf32>
    %33 = vector.shape_cast %32 : vector<1x4x1x8xf32> to vector<4x1x8xf32>
    %34 = vector.broadcast %33 : vector<4x1x8xf32> to vector<4x8x8xf32>
    %35 = arith.addf %31, %34 : vector<4x8x8xf32>
    %36 = arith.truncf %21 : vector<4x8x8xf32> to vector<4x8x8xbf16>
    %37 = arith.truncf %28 : vector<4x8x8xf32> to vector<4x8x8xbf16>
    %38 = arith.truncf %35 : vector<4x8x8xf32> to vector<4x8x8xbf16>
    "tpu.trace_start"() <{level = 10 : i32, message = "nqd,nkd->nqk"}> : () -> ()
    %cst_36 = arith.constant dense<0.000000e+00> : vector<4x8x8xf32>
    %39 = tpu.matmul %36, %37, %cst_36 {dimension_numbers = #tpu.dot_dimension_numbers<[2], [2], [1], [1], [0, 0, 0, 1, 1, 1], [0], [0]>} : vector<4x8x8xbf16>, vector<4x8x8xbf16>, vector<4x8x8xf32> -> vector<4x8x8xf32>
    "tpu.trace_stop"() : () -> ()
    %40 = vector.broadcast %10 : vector<4x1x8xf32> to vector<4x8x8xf32>
    %41 = arith.subf %39, %40 : vector<4x8x8xf32>
    %cst_37 = arith.constant dense<0xFF800000> : vector<4x8xf32>
    %42 = vector.multi_reduction <maximumf>, %41, %cst_37 [2] : vector<4x8x8xf32> to vector<4x8xf32>
    %43 = vector.shape_cast %42 : vector<4x8xf32> to vector<4x8x1xf32>
    %44 = vector.broadcast %43 : vector<4x8x1xf32> to vector<4x8x8xf32>
    %45 = arith.subf %41, %44 : vector<4x8x8xf32>
    %46 = math.exp %45 : vector<4x8x8xf32>
    %cst_38 = arith.constant dense<0.000000e+00> : vector<4x8xf32>
    %47 = vector.multi_reduction <add>, %46, %cst_38 [2] : vector<4x8x8xf32> to vector<4x8xf32>
    %48 = vector.shape_cast %47 : vector<4x8xf32> to vector<4x8x1xf32>
    %49 = tpu.reciprocal %48 {approx = true} : vector<4x8x1xf32> -> vector<4x8x1xf32>
    %50 = vector.broadcast %49 : vector<4x8x1xf32> to vector<4x8x8xf32>
    %51 = arith.mulf %46, %50 : vector<4x8x8xf32>
    %52 = arith.truncf %51 : vector<4x8x8xf32> to vector<4x8x8xbf16>
    "tpu.trace_start"() <{level = 10 : i32, message = "nqk,nkd->nqd"}> : () -> ()
    %cst_39 = arith.constant dense<0.000000e+00> : vector<4x8x8xf32>
    %53 = tpu.matmul %52, %38, %cst_39 {dimension_numbers = #tpu.dot_dimension_numbers<[2], [1], [1], [2], [0, 0, 0, 1, 1, 2], [0], [0]>} : vector<4x8x8xbf16>, vector<4x8x8xbf16>, vector<4x8x8xf32> -> vector<4x8x8xf32>
    "tpu.trace_stop"() : () -> ()
    %54 = arith.truncf %53 : vector<4x8x8xf32> to vector<4x8x8xbf16>
    %c0_40 = arith.constant 0 : index
    %c0_41 = arith.constant 0 : index
    %c0_42 = arith.constant 0 : index
    %c0_43 = arith.constant 0 : index
    %55 = vector.load %arg11[%c0_40, %c0_41, %c0_42, %c0_43] : memref<1x4x8x32xbf16, #tpu.memory_space<vmem>>, vector<1x4x8x32xbf16>
    %56 = vector.shape_cast %55 : vector<1x4x8x32xbf16> to vector<4x8x32xbf16>
    "tpu.trace_start"() <{level = 10 : i32, message = "hnd,hdo->hno"}> : () -> ()
    %cst_44 = arith.constant dense<0.000000e+00> : vector<4x8x32xf32>
    %57 = tpu.matmul %54, %56, %cst_44 {dimension_numbers = #tpu.dot_dimension_numbers<[2], [1], [1], [2], [0, 0, 0, 1, 1, 2], [0], [0]>} : vector<4x8x8xbf16>, vector<4x8x32xbf16>, vector<4x8x32xf32> -> vector<4x8x32xf32>
    "tpu.trace_stop"() : () -> ()
    %cst_45 = arith.constant dense<0.000000e+00> : vector<8x32xf32>
    %58 = vector.multi_reduction <add>, %57, %cst_45 [0] : vector<4x8x32xf32> to vector<8x32xf32>
    %c0_46 = arith.constant 0 : index
    %c0_47 = arith.constant 0 : index
    %c0_48 = arith.constant 0 : index
    %59 = vector.load %arg12[%c0_46, %c0_47, %c0_48] : memref<1x1x32xf32, #tpu.memory_space<vmem>>, vector<1x1x32xf32>
    %60 = vector.shape_cast %59 : vector<1x1x32xf32> to vector<1x32xf32>
    %61 = vector.broadcast %60 : vector<1x32xf32> to vector<8x32xf32>
    %62 = arith.addf %58, %61 : vector<8x32xf32>
    %63 = arith.addf %62, %4 : vector<8x32xf32>
    %c0_49 = arith.constant 0 : index
    %c0_50 = arith.constant 0 : index
    %c0_51 = arith.constant 0 : index
    %64 = vector.load %arg13[%c0_49, %c0_50, %c0_51] : memref<1x1x32xf32, #tpu.memory_space<vmem>>, vector<1x1x32xf32>
    %65 = vector.shape_cast %64 : vector<1x1x32xf32> to vector<1x32xf32>
    %c0_52 = arith.constant 0 : index
    %c0_53 = arith.constant 0 : index
    %c0_54 = arith.constant 0 : index
    %66 = vector.load %arg14[%c0_52, %c0_53, %c0_54] : memref<1x1x32xf32, #tpu.memory_space<vmem>>, vector<1x1x32xf32>
    %67 = vector.shape_cast %66 : vector<1x1x32xf32> to vector<1x32xf32>
    %cst_55 = arith.constant dense<0.000000e+00> : vector<8xf32>
    %68 = vector.multi_reduction <add>, %63, %cst_55 [1] : vector<8x32xf32> to vector<8xf32>
    %69 = vector.shape_cast %68 : vector<8xf32> to vector<8x1xf32>
    %cst_56 = arith.constant 3.200000e+01 : f32
    %70 = vector.broadcast %cst_56 : f32 to vector<8x1xf32>
    %71 = arith.divf %69, %70 : vector<8x1xf32>
    %72 = vector.broadcast %71 : vector<8x1xf32> to vector<8x32xf32>
    %73 = arith.subf %63, %72 : vector<8x32xf32>
    %74 = arith.mulf %73, %73 : vector<8x32xf32>
    %cst_57 = arith.constant dense<0.000000e+00> : vector<8xf32>
    %75 = vector.multi_reduction <add>, %74, %cst_57 [1] : vector<8x32xf32> to vector<8xf32>
    %76 = vector.shape_cast %75 : vector<8xf32> to vector<8x1xf32>
    %cst_58 = arith.constant 3.200000e+01 : f32
    %77 = vector.broadcast %cst_58 : f32 to vector<8x1xf32>
    %78 = arith.divf %76, %77 : vector<8x1xf32>
    %79 = vector.broadcast %71 : vector<8x1xf32> to vector<8x32xf32>
    %80 = arith.subf %63, %79 : vector<8x32xf32>
    %cst_59 = arith.constant 9.99999974E-6 : f32
    %81 = vector.broadcast %cst_59 : f32 to vector<8x1xf32>
    %82 = arith.addf %78, %81 : vector<8x1xf32>
    %83 = math.rsqrt %82 : vector<8x1xf32>
    %84 = vector.broadcast %83 : vector<8x1xf32> to vector<8x32xf32>
    %85 = arith.mulf %80, %84 : vector<8x32xf32>
    %86 = vector.broadcast %65 : vector<1x32xf32> to vector<8x32xf32>
    %87 = arith.mulf %85, %86 : vector<8x32xf32>
    %88 = vector.broadcast %67 : vector<1x32xf32> to vector<8x32xf32>
    %89 = arith.addf %87, %88 : vector<8x32xf32>
    %90 = vector.broadcast %6 : vector<8x1xf32> to vector<8x32xf32>
    %91 = arith.mulf %89, %90 : vector<8x32xf32>
    %92 = arith.truncf %91 : vector<8x32xf32> to vector<8x32xbf16>
    %c0_60 = arith.constant 0 : index
    %c0_61 = arith.constant 0 : index
    %c0_62 = arith.constant 0 : index
    %93 = vector.load %arg15[%c0_60, %c0_61, %c0_62] : memref<1x32x64xbf16, #tpu.memory_space<vmem>>, vector<1x32x64xbf16>
    %94 = vector.shape_cast %93 : vector<1x32x64xbf16> to vector<32x64xbf16>
    %cst_63 = arith.constant dense<0.000000e+00> : vector<8x64xf32>
    %95 = tpu.matmul %92, %94, %cst_63 {dimension_numbers = #tpu.dot_dimension_numbers<[1], [0], [0], [1], [0, 0, 1, 1], [], []>} : vector<8x32xbf16>, vector<32x64xbf16>, vector<8x64xf32> -> vector<8x64xf32>
    %c0_64 = arith.constant 0 : index
    %c0_65 = arith.constant 0 : index
    %c0_66 = arith.constant 0 : index
    %96 = vector.load %arg16[%c0_64, %c0_65, %c0_66] : memref<1x1x64xf32, #tpu.memory_space<vmem>>, vector<1x1x64xf32>
    %97 = vector.shape_cast %96 : vector<1x1x64xf32> to vector<1x64xf32>
    %98 = vector.broadcast %97 : vector<1x64xf32> to vector<8x64xf32>
    %99 = arith.addf %95, %98 : vector<8x64xf32>
    %cst_67 = arith.constant 0.000000e+00 : f32
    %100 = vector.broadcast %cst_67 : f32 to vector<8x64xf32>
    %101 = arith.maximumf %99, %100 : vector<8x64xf32>
    %102 = arith.truncf %101 : vector<8x64xf32> to vector<8x64xbf16>
    %c0_68 = arith.constant 0 : index
    %c0_69 = arith.constant 0 : index
    %c0_70 = arith.constant 0 : index
    %103 = vector.load %arg17[%c0_68, %c0_69, %c0_70] : memref<1x64x32xbf16, #tpu.memory_space<vmem>>, vector<1x64x32xbf16>
    %104 = vector.shape_cast %103 : vector<1x64x32xbf16> to vector<64x32xbf16>
    %cst_71 = arith.constant dense<0.000000e+00> : vector<8x32xf32>
    %105 = tpu.matmul %102, %104, %cst_71 {dimension_numbers = #tpu.dot_dimension_numbers<[1], [0], [0], [1], [0, 0, 1, 1], [], []>} : vector<8x64xbf16>, vector<64x32xbf16>, vector<8x32xf32> -> vector<8x32xf32>
    %c0_72 = arith.constant 0 : index
    %c0_73 = arith.constant 0 : index
    %c0_74 = arith.constant 0 : index
    %106 = vector.load %arg18[%c0_72, %c0_73, %c0_74] : memref<1x1x32xf32, #tpu.memory_space<vmem>>, vector<1x1x32xf32>
    %107 = vector.shape_cast %106 : vector<1x1x32xf32> to vector<1x32xf32>
    %108 = vector.broadcast %107 : vector<1x32xf32> to vector<8x32xf32>
    %109 = arith.addf %105, %108 : vector<8x32xf32>
    %110 = arith.addf %109, %91 : vector<8x32xf32>
    %c0_75 = arith.constant 0 : index
    %c0_76 = arith.constant 0 : index
    %c0_77 = arith.constant 0 : index
    %111 = vector.load %arg19[%c0_75, %c0_76, %c0_77] : memref<1x1x32xf32, #tpu.memory_space<vmem>>, vector<1x1x32xf32>
    %112 = vector.shape_cast %111 : vector<1x1x32xf32> to vector<1x32xf32>
    %c0_78 = arith.constant 0 : index
    %c0_79 = arith.constant 0 : index
    %c0_80 = arith.constant 0 : index
    %113 = vector.load %arg20[%c0_78, %c0_79, %c0_80] : memref<1x1x32xf32, #tpu.memory_space<vmem>>, vector<1x1x32xf32>
    %114 = vector.shape_cast %113 : vector<1x1x32xf32> to vector<1x32xf32>
    %cst_81 = arith.constant dense<0.000000e+00> : vector<8xf32>
    %115 = vector.multi_reduction <add>, %110, %cst_81 [1] : vector<8x32xf32> to vector<8xf32>
    %116 = vector.shape_cast %115 : vector<8xf32> to vector<8x1xf32>
    %cst_82 = arith.constant 3.200000e+01 : f32
    %117 = vector.broadcast %cst_82 : f32 to vector<8x1xf32>
    %118 = arith.divf %116, %117 : vector<8x1xf32>
    %119 = vector.broadcast %118 : vector<8x1xf32> to vector<8x32xf32>
    %120 = arith.subf %110, %119 : vector<8x32xf32>
    %121 = arith.mulf %120, %120 : vector<8x32xf32>
    %cst_83 = arith.constant dense<0.000000e+00> : vector<8xf32>
    %122 = vector.multi_reduction <add>, %121, %cst_83 [1] : vector<8x32xf32> to vector<8xf32>
    %123 = vector.shape_cast %122 : vector<8xf32> to vector<8x1xf32>
    %cst_84 = arith.constant 3.200000e+01 : f32
    %124 = vector.broadcast %cst_84 : f32 to vector<8x1xf32>
    %125 = arith.divf %123, %124 : vector<8x1xf32>
    %126 = vector.broadcast %118 : vector<8x1xf32> to vector<8x32xf32>
    %127 = arith.subf %110, %126 : vector<8x32xf32>
    %cst_85 = arith.constant 9.99999974E-6 : f32
    %128 = vector.broadcast %cst_85 : f32 to vector<8x1xf32>
    %129 = arith.addf %125, %128 : vector<8x1xf32>
    %130 = math.rsqrt %129 : vector<8x1xf32>
    %131 = vector.broadcast %130 : vector<8x1xf32> to vector<8x32xf32>
    %132 = arith.mulf %127, %131 : vector<8x32xf32>
    %133 = vector.broadcast %112 : vector<1x32xf32> to vector<8x32xf32>
    %134 = arith.mulf %132, %133 : vector<8x32xf32>
    %135 = vector.broadcast %114 : vector<1x32xf32> to vector<8x32xf32>
    %136 = arith.addf %134, %135 : vector<8x32xf32>
    %137 = vector.broadcast %6 : vector<8x1xf32> to vector<8x32xf32>
    %138 = arith.mulf %136, %137 : vector<8x32xf32>
    %139 = vector.shape_cast %138 : vector<8x32xf32> to vector<1x8x32xf32>
    %c0_86 = arith.constant 0 : index
    %c0_87 = arith.constant 0 : index
    %c0_88 = arith.constant 0 : index
    %140 = vector.load %arg21[%c0_86, %c0_87, %c0_88] : memref<1x8x32xf32, #tpu.memory_space<vmem>>, vector<1x8x32xf32>
    tpu.vector_store %arg21[%c0_86, %c0_87, %c0_88], %139 {strides = array<i32>} : memref<1x8x32xf32, #tpu.memory_space<vmem>>, vector<1x8x32xf32>,
    return
  }
  func.func @transform_0(%arg0: i32, %arg1: i32) -> (i32, i32, i32) {
    %c0_i32 = arith.constant 0 : i32
    %c0_i32_0 = arith.constant 0 : i32
    %c0_i32_1 = arith.constant 0 : i32
    return %arg0, %c0_i32, %c0_i32_0 : i32, i32, i32
  }
  func.func @transform_1(%arg0: i32, %arg1: i32) -> (i32, i32, i32) {
    %c0_i32 = arith.constant 0 : i32
    %c0_i32_0 = arith.constant 0 : i32
    %c0_i32_1 = arith.constant 0 : i32
    return %arg0, %c0_i32, %c0_i32_0 : i32, i32, i32
  }
  func.func @transform_2(%arg0: i32, %arg1: i32) -> (i32, i32, i32) {
    %c0_i32 = arith.constant 0 : i32
    %c0_i32_0 = arith.constant 0 : i32
    %c0_i32_1 = arith.constant 0 : i32
    return %arg0, %c0_i32, %c0_i32_0 : i32, i32, i32
  }
  func.func @transform_3(%arg0: i32, %arg1: i32) -> (i32, i32, i32, i32) {
    %c0_i32 = arith.constant 0 : i32
    %c0_i32_0 = arith.constant 0 : i32
    %c0_i32_1 = arith.constant 0 : i32
    %c0_i32_2 = arith.constant 0 : i32
    return %arg1, %c0_i32, %c0_i32_0, %c0_i32_1 : i32, i32, i32, i32
  }
  func.func @transform_4(%arg0: i32, %arg1: i32) -> (i32, i32, i32, i32) {
    %c0_i32 = arith.constant 0 : i32
    %c0_i32_0 = arith.constant 0 : i32
    %c0_i32_1 = arith.constant 0 : i32
    %c0_i32_2 = arith.constant 0 : i32
    return %arg1, %c0_i32, %c0_i32_0, %c0_i32_1 : i32, i32, i32, i32
  }
  func.func @transform_5(%arg0: i32, %arg1: i32) -> (i32, i32, i32, i32) {
    %c0_i32 = arith.constant 0 : i32
    %c0_i32_0 = arith.constant 0 : i32
    %c0_i32_1 = arith.constant 0 : i32
    %c0_i32_2 = arith.constant 0 : i32
    return %arg1, %c0_i32, %c0_i32_0, %c0_i32_1 : i32, i32, i32, i32
  }
  func.func @transform_6(%arg0: i32, %arg1: i32) -> (i32, i32, i32, i32) {
    %c0_i32 = arith.constant 0 : i32
    %c0_i32_0 = arith.constant 0 : i32
    %c0_i32_1 = arith.constant 0 : i32
    %c0_i32_2 = arith.constant 0 : i32
    return %arg1, %c0_i32, %c0_i32_0, %c0_i32_1 : i32, i32, i32, i32
  }
  func.func @transform_7(%arg0: i32, %arg1: i32) -> (i32, i32, i32, i32) {
    %c0_i32 = arith.constant 0 : i32
    %c0_i32_0 = arith.constant 0 : i32
    %c0_i32_1 = arith.constant 0 : i32
    %c0_i32_2 = arith.constant 0 : i32
    return %arg1, %c0_i32, %c0_i32_0, %c0_i32_1 : i32, i32, i32, i32
  }
  func.func @transform_8(%arg0: i32, %arg1: i32) -> (i32, i32, i32, i32) {
    %c0_i32 = arith.constant 0 : i32
    %c0_i32_0 = arith.constant 0 : i32
    %c0_i32_1 = arith.constant 0 : i32
    %c0_i32_2 = arith.constant 0 : i32
    return %arg1, %c0_i32, %c0_i32_0, %c0_i32_1 : i32, i32, i32, i32
  }
  func.func @transform_9(%arg0: i32, %arg1: i32) -> (i32, i32, i32, i32) {
    %c0_i32 = arith.constant 0 : i32
    %c0_i32_0 = arith.constant 0 : i32
    %c0_i32_1 = arith.constant 0 : i32
    %c0_i32_2 = arith.constant 0 : i32
    return %arg1, %c0_i32, %c0_i32_0, %c0_i32_1 : i32, i32, i32, i32
  }
  func.func @transform_10(%arg0: i32, %arg1: i32) -> (i32, i32, i32) {
    %c0_i32 = arith.constant 0 : i32
    %c0_i32_0 = arith.constant 0 : i32
    %c0_i32_1 = arith.constant 0 : i32
    return %arg1, %c0_i32, %c0_i32_0 : i32, i32, i32
  }
  func.func @transform_11(%arg0: i32, %arg1: i32) -> (i32, i32, i32) {
    %c0_i32 = arith.constant 0 : i32
    %c0_i32_0 = arith.constant 0 : i32
    %c0_i32_1 = arith.constant 0 : i32
    return %arg1, %c0_i32, %c0_i32_0 : i32, i32, i32
  }
  func.func @transform_12(%arg0: i32, %arg1: i32) -> (i32, i32, i32) {
    %c0_i32 = arith.constant 0 : i32
    %c0_i32_0 = arith.constant 0 : i32
    %c0_i32_1 = arith.constant 0 : i32
    return %arg1, %c0_i32, %c0_i32_0 : i32, i32, i32
  }
  func.func @transform_13(%arg0: i32, %arg1: i32) -> (i32, i32, i32) {
    %c0_i32 = arith.constant 0 : i32
    %c0_i32_0 = arith.constant 0 : i32
    %c0_i32_1 = arith.constant 0 : i32
    return %arg1, %c0_i32, %c0_i32_0 : i32, i32, i32
  }
  func.func @transform_14(%arg0: i32, %arg1: i32) -> (i32, i32, i32) {
    %c0_i32 = arith.constant 0 : i32
    %c0_i32_0 = arith.constant 0 : i32
    %c0_i32_1 = arith.constant 0 : i32
    return %arg1, %c0_i32, %c0_i32_0 : i32, i32, i32
  }
  func.func @transform_15(%arg0: i32, %arg1: i32) -> (i32, i32, i32) {
    %c0_i32 = arith.constant 0 : i32
    %c0_i32_0 = arith.constant 0 : i32
    %c0_i32_1 = arith.constant 0 : i32
    return %arg1, %c0_i32, %c0_i32_0 : i32, i32, i32
  }
  func.func @transform_16(%arg0: i32, %arg1: i32) -> (i32, i32, i32) {
    %c0_i32 = arith.constant 0 : i32
    %c0_i32_0 = arith.constant 0 : i32
    %c0_i32_1 = arith.constant 0 : i32
    return %arg1, %c0_i32, %c0_i32_0 : i32, i32, i32
  }
  func.func @transform_17(%arg0: i32, %arg1: i32) -> (i32, i32, i32) {
    %c0_i32 = arith.constant 0 : i32
    %c0_i32_0 = arith.constant 0 : i32
    %c0_i32_1 = arith.constant 0 : i32
    return %arg1, %c0_i32, %c0_i32_0 : i32, i32, i32
  }
  func.func @transform_18(%arg0: i32, %arg1: i32) -> (i32, i32, i32) {
    %c0_i32 = arith.constant 0 : i32
    %c0_i32_0 = arith.constant 0 : i32
    %c0_i32_1 = arith.constant 0 : i32
    return %arg1, %c0_i32, %c0_i32_0 : i32, i32, i32
  }
  func.func @transform_19(%arg0: i32, %arg1: i32) -> (i32, i32, i32) {
    %c0_i32 = arith.constant 0 : i32
    %c0_i32_0 = arith.constant 0 : i32
    %c0_i32_1 = arith.constant 0 : i32
    return %arg0, %c0_i32, %c0_i32_0 : i32, i32, i32
  }
}

</mosaic_0001>

<bundles_post_ra>
// kernel: tpu_custom_call.1
= control target key start
LH: loop header
LB: loop body
LE: loop exit
PB: predicated region body
PF: predicated region fallthrough
CT: control target
= control target key end

     0   :  { %s4013_s0 = inlined_call_operand.vmem [shape: f32[2,8,32], index: 0, kind: input, shape index: {}]   ;;  %s4014_s1 = inlined_call_operand.vmem [shape: f32[2,1,8], index: 1, kind: input, shape index: {}]   ;;  %s4015_s2 = inlined_call_operand.vmem [shape: f32[2,8,1], index: 2, kind: input, shape index: {}]   ;;  %s4016_s3 = inlined_call_operand.vmem [shape: bf16[2,4,32,8], index: 3, kind: input, shape index: {}]   ;;  %s4017_s4 = inlined_call_operand.vmem [shape: f32[2,4,1,8], index: 4, kind: input, shape index: {}]   ;;  %s4018_s5 = inlined_call_operand.vmem [shape: bf16[2,4,32,8], index: 5, kind: input, shape index: {}]   ;;  %s4019_s6 = inlined_call_operand.vmem [shape: f32[2,4,1,8], index: 6, kind: input, shape index: {}]   ;;  %s4020_s7 = inlined_call_operand.vmem [shape: bf16[2,4,32,8], index: 7, kind: input, shape index: {}]   ;;  %s4021_s8 = inlined_call_operand.vmem [shape: f32[2,4,1,8], index: 8, kind: input, shape index: {}]   ;;  %s4022_s9 = inlined_call_operand.vmem [shape: bf16[2,4,8,32], index: 9, kind: input, shape index: {}]   ;;  %s4023_s10 = inlined_call_operand.vmem [shape: f32[2,1,32], index: 10, kind: input, shape index: {}]   ;;  %s4024_s11 = inlined_call_operand.vmem [shape: f32[2,1,32], index: 11, kind: input, shape index: {}]   ;;  %s4025_s12 = inlined_call_operand.vmem [shape: f32[2,1,32], index: 12, kind: input, shape index: {}]   ;;  %s4026_s13 = inlined_call_operand.vmem [shape: bf16[2,32,64], index: 13, kind: input, shape index: {}]   ;;  %s4027_s14 = inlined_call_operand.vmem [shape: f32[2,1,64], index: 14, kind: input, shape index: {}]   ;;  %s4028_s15 = inlined_call_operand.vmem [shape: bf16[2,64,32], index: 15, kind: input, shape index: {}]   ;;  %s4029_s16 = inlined_call_operand.vmem [shape: f32[2,1,32], index: 16, kind: input, shape index: {}]   ;;  %s4030_s17 = inlined_call_operand.vmem [shape: f32[2,1,32], index: 17, kind: input, shape index: {}]   ;;  %s4031_s18 = inlined_call_operand.vmem [shape: f32[2,1,32], index: 18, kind: input, shape index: {}]   ;;  %s4032_s19 = inlined_call_operand.hbm [shape: f32[2,8,32], index: 19, kind: output, shape index: {}]  }
   0x1   :  { %4050 = sst [smem:[#allocation21_spill]] %s4013_s0 }
   0x2   :  { %4051 = sst [smem:[#allocation22_spill]] %s4014_s1 }
   0x3   :  { %4052 = sst [smem:[#allocation23_spill]] %s4015_s2 }
   0x4   :  { %4053 = sst [smem:[#allocation24_spill]] %s4016_s3 }
   0x5   :  { %4054 = sst [smem:[#allocation25_spill]] %s4017_s4 }
   0x6   :  { %4055 = sst [smem:[#allocation26_spill]] %s4018_s5 }
   0x7   :  { %4056 = sst [smem:[#allocation27_spill]] %s4019_s6 }
   0x8   :  { %4057 = sst [smem:[#allocation28_spill]] %s4020_s7 }
   0x9   :  { %4058 = sst [smem:[#allocation29_spill]] %s4021_s8 }
   0xa   :  { %4059 = sst [smem:[#allocation30_spill]] %s4022_s9 }
   0xb   :  { %4060 = sst [smem:[#allocation31_spill]] %s4023_s10 }
   0xc   :  { %4061 = sst [smem:[#allocation32_spill]] %s4024_s11 }
   0xd   :  { %4062 = sst [smem:[#allocation33_spill]] %s4025_s12 }
   0xe   :  { %4063 = sst [smem:[#allocation34_spill]] %s4026_s13 }
   0xf   :  { %4064 = sst [smem:[#allocation35_spill]] %s4027_s14 }
  0x10   :  { %4065 = sst [smem:[#allocation36_spill]] %s4028_s15 }
  0x11   :  { %4066 = sst [smem:[#allocation37_spill]] %s4029_s16 }
  0x12   :  { %4067 = sst [smem:[#allocation38_spill]] %s4030_s17 }
  0x13   :  { %4068 = sst [smem:[#allocation39_spill]] %s4031_s18 }
  0x14   :  { %4069 = sst [smem:[#allocation40_spill]] %s4032_s19 }
  0x15   :  { %24 = vsyncpa [#allocation3], 0 }
  0x16   :  { %26 = vsyncpa [#allocation3 + $0x1], 0  ;;  %s3517_s0 = smov 0   ;;  %s3519_s30 = smov 0  }
  0x17   :  { %s3521_s20 = smov 0   ;;  %s3523_s21 = smov 0  }
  0x18   :  { %s3525_s1 = smov 0   ;;  %s3527_s22 = smov 0  }
  0x19   :  { %s3529_s2 = smov 0   ;;  %s3531_s23 = smov 0  }
  0x1a LB: > { %4070 = sst [smem:[#allocation5_spill]] %s3383_s0  ;;  %s2827_s24 = sadd.s32 4294967295, %s3411_s23   ;;  %s3411_s23 = sphi %s3531_s23, %s32_s23   ;;  %s3407_s2 = sphi %s3529_s2, %s4137_s2   ;;  %s3403_s22 = sphi %s3527_s22, %s4136_s22   ;;  %s3399_s1 = sphi %s3525_s1, %s4135_s1   ;;  %s3395_s21 = sphi %s3523_s21, %s4134_s21   ;;  %s3391_s20 = sphi %s3521_s20, %s4133_s20   ;;  %s3387_s30 = sphi %s3519_s30, %s4132_s30   ;;  %s3383_s0 = sphi %s3517_s0, %s4131_s0  }
  0x1b   : > { %4071 = sst [smem:[#allocation6_spill]] %s3387_s30  ;;  %s2828_s25 = sadd.s32 4294967294, %s3411_s23  }
  0x1c   : > { %4072 = sst [smem:[#allocation7_spill]] %s3391_s20  ;;  %s41_s3 = sadd.s32 1, %s3403_s22 }
  0x1d   : > { %4073 = sst [smem:[#allocation8_spill]] %s3395_s21  ;;  %p42_p0 = scmp.ge.s32.totalorder %s41_s3, 2 }
  0x1e   : > { %4074 = sst [smem:[#allocation9_spill]] %s3399_s1  ;;  %s44_s26 = sadd.s32 1, %s3407_s2 }
  0x1f   : > { %4075 = sst [smem:[#allocation10_spill]] %s3403_s22  ;;  %p555_p1 = scmp.ne.s32.totalorder %s3391_s20, %s3387_s30 }
  0x20   : > { %4076 = sst [smem:[#allocation11_spill]] %s3407_s2  ;;  %p556_p2 = scmp.eq.s32.totalorder %s2827_s24, 3 }
  0x21   : > { %4077 = sst [smem:[#allocation12_spill]] %s3411_s23  ;;  %s4139_s3 = smov (%p42_p0, %s41_s3), 0 }
  0x22   : > { %4078 = sst [smem:[#allocation13_spill]] %s4139_s3  ;;  %s4141_s26 = smov (!%p42_p0, %s44_s26), %s3407_s2 }
  0x23   : > { %p3566_p3 = por %p556_p2, %p555_p1  ;;  %p561_p4 = scmp.ne.s32.totalorder %s3387_s30, %s3383_s0 }
  0x24   : > { %p46_p5 = scmp.ge.s32.totalorder %s4141_s26, 2  ;;  %p562_p6 = scmp.eq.s32.totalorder %s2828_s25, 3 }
  0x25   : > { %s4079_s27 = scalar_select %p3566_p3, 1, 0 }
  0x26   : > { %p2831_p7 = scmp.ge.s32.totalorder %s3411_s23, 1  ;;  %p711_p8 = scmp.lt.s32.totalorder %s3411_s23, 5 }
  0x27   : > { %4080 = sst [smem:[#allocation14_spill]] %s4079_s27  ;;  %s4143_s26 = smov (%p46_p5, %s4141_s26), 0 }
  0x28   : > { %4081 = sst [smem:[#allocation15_spill]] %s4143_s26  ;;  %p3576_p9 = por %p562_p6, %p561_p4 }
  0x29   : > { %p712_p10 = pnand %p2831_p7, %p711_p8  ;;  %s542_s29 = ssub.s32 %s3407_s2, %s4143_s26 }
  0x2a   : > { %s4082_s28 = scalar_select %p3576_p9, 1, 0 }
  0x2b   : > { %s545_s24 = sadd.s32 1, %s3391_s20  ;;  %p543_p11 = scmp.eq.s32.totalorder %s542_s29, 0 }
  0x2c   : > { %4083 = sst [smem:[#allocation16_spill]] %s4082_s28  ;;  %715 = sbr.rel (%p712_p10) target bundleno = 2392 (0x958), region = 96 }
  0x2d   : > { %s3584_s3 = scalar_select %p543_p11, %s3391_s20, %s545_s24  }
  0x2f   : > { %4084 = sst [smem:[#allocation17_spill]] %s3584_s3 }
  0x33   : > { %s4039_s25 = sand.u32 1, %s3387_s30   ;;  %p836_p12 = scmp.lt.s32.totalorder %s3399_s1, 1 }
  0x34   : > { %s2832_s22 = sshll.u32 %s4039_s25, 3  ;;  %p847_p13 = scmp.lt.s32.totalorder %s3395_s21, 1 }
  0x35   : > { %s3592_s0 = scalar_select %p836_p12, %s3399_s1, 1 }
  0x36   : > { %s3595_s26 = scalar_select %p847_p13, %s3395_s21, 1 }
  0x37   : > { %4085 = sst [smem:[#allocation18_spill]] %s3592_s0  ;;  %s2833_s29 = sshll.u32 %s3592_s0, 3 }
  0x38   : > { %s4087_s23 = sld [smem:[#allocation21_spill]]  ;;  %s4088_s1 = sld [smem:[#allocation23_spill]] }
  0x39   : > { %s2930_s18 = sshll.u32 %s3595_s26, 6  ;;  %s2837_s17 = sshll.u32 %s3595_s26, 2 }
  0x3a   : > { %s4090_s14 = sld [smem:[#allocation24_spill]]  ;;  %s4091_s4 = sld [smem:[#allocation25_spill]] }
  0x3b   : > { %s4092_s5 = sld [smem:[#allocation26_spill]]  ;;  %s4093_s6 = sld [smem:[#allocation27_spill]] }
  0x3c   : > { %s4094_s7 = sld [smem:[#allocation28_spill]]  ;;  %s4095_s8 = sld [smem:[#allocation29_spill]] }
  0x3d   : > { %s4097_s9 = sld [smem:[#allocation30_spill]]  ;;  %s4101_s13 = sld [smem:[#allocation34_spill]] }
  0x3e   : > { %s839_s19 = scalar_lea.vmem %s4087_s23, %s2833_s29  ;;  %s3608_s21 = scalar_lea.vmem %s4088_s1, %s2833_s29 }
  0x3f   : > { %4089 = sst [smem:[#allocation19_spill]] %s3608_s21  ;;  %s2935_s0 = sshll.u32 %s3595_s26, 5 }
  0x40   : > { %s3615_s2 = scalar_lea.vmem %s4090_s14, %s2930_s18  ;;  %s3620_s23 = scalar_lea.vmem %s4091_s4, %s2837_s17 }
  0x41   : > { %s3625_s1 = scalar_lea.vmem %s4092_s5, %s2930_s18  ;;  %s3630_s29 = scalar_lea.vmem %s4093_s6, %s2837_s17 }
  0x42   : > { %s3635_s16 = scalar_lea.vmem %s4094_s7, %s2930_s18  ;;  %s3640_s20 = scalar_lea.vmem %s4095_s8, %s2837_s17 }
  0x43   : > { %s2933_s4 = sshll.u32 %s3595_s26, 4  ;;  %s4102_s5 = sld [smem:[#allocation35_spill]] }
  0x44   : > { %s3650_s27 = scalar_lea.vmem %s4097_s9, %s2933_s4  ;;  %s3663_s7 = scalar_lea.vmem %s4101_s13, %s2933_s4 }
  0x45   : > { %4098 = sst [smem:[#allocation20_spill]] %s3650_s27  ;;  %s4103_s10 = sld [smem:[#allocation36_spill]] }
  0x46   : > { %s4104_s18 = sld [smem:[#allocation37_spill]]  ;;  %s4105_s12 = sld [smem:[#allocation38_spill]] }
  0x47   : > { %s4106_s13 = sld [smem:[#allocation39_spill]]  ;;  %s3687_s28 = scalar_lea.vmem [#allocation2], %s2832_s22 }
  0x49   : > { %s895_s8 = scalar_lea.vmem %s4102_s5, %s3595_s26  ;;  %s4107_s5 = sld [smem:[#allocation8_spill]] }
  0x4b   : > { %s3673_s27 = scalar_lea.vmem %s4103_s10, %s2935_s0 }
  0x4c   : > { %s903_s15 = scalar_lea.vmem %s4104_s18, %s3595_s26  ;;  %s906_s17 = scalar_lea.vmem %s4105_s12, %s3595_s26 }
  0x4d   : > { %s909_s11 = scalar_lea.vmem %s4106_s13, %s3595_s26 }
  0x4f   : > { %p2850_p0 = scmp.ne.s32.totalorder %s4107_s5, 0 }
  0x50   : > { %v915_v0 = vld [vmem:[%s839_s19] sm:$0xff] (!%p2850_p0)  ;;  %vm916_vm0 = vcmask (!%p2850_p0), 261120  }
  0x51   : > { %914 = sbr.rel (%p2850_p0) target bundleno = 88 (0x58), region = 100  ;;  %917 = vst.msk [vmem:[%s3687_s28] sm:$0xff] (!%p2850_p0), %vm916_vm0, %v915_v0 }
  0x58 PF: > { %v3267_v1 = vld [vmem:[%s3615_s2] sm:$0xff]   ;;  %v3413_v2 = vmov 0.0   ;;  %v3268_v3 = vld [vmem:[%s3615_s2 + $0x10] sm:$0xff]   ;;  %v3269_v4 = vld [vmem:[%s3615_s2 + $0x8] sm:$0xff]   ;;  %vm3414_vm1 = vmmov 0   ;;  %vm979_vm2 = vcmask 261120  }
  0x59   : > { %3004 = vmatprep.subr.bf16.mxu0 %v3413_v2  ;;  %3012 = vmatprep.subr.bf16.mxu1 %v3413_v2  ;;  %v3270_v5 = vld [vmem:[%s3615_s2 + $0x18] sm:$0xff]   ;;  %v3704_v6 = vld [vmem:[%s3687_s28] sm:$0xff]  ;;  %v3272_v9 = vld [vmem:[%s3615_s2 + $0x30] sm:$0xff]   ;;  %vm1695_vm3 = vcmask 64512   ;;  %vm1941_vm4 = vcmask 1043456   ;;  %s4108_s9 = sld [smem:[#allocation18_spill]] }
  0x5a   : > { %3005 = vmatpush3.bf16.msra.mxu0 %v3267_v1  ;;  %3008 = vmatprep.mubr.msk.bf16.mxu0 %vm3414_vm1, %v3413_v2  ;;  %v3708_v7 = vpack.c.bf16 %v3704_v6, %v3704_v6  ;;  %v3271_v8 = vld [vmem:[%s3615_s2 + $0x20] sm:$0xff]   ;;  %v3273_v10 = vld [vmem:[%s3615_s2 + $0x28] sm:$0xff]   ;;  %v3274_v11 = vld [vmem:[%s3615_s2 + $0x38] sm:$0xff]   ;;  %s4109_s13 = sld [smem:[#allocation22_spill]]  ;;  %s4111_s22 = sld [smem:[#allocation20_spill]]  ;;  %vm2475_vm5 = vcmask 523264  }
  0x5b   : > { %3013 = vmatpush3.bf16.msra.mxu1 %v3268_v3  ;;  %3006 = vmatprep.subr.bf16.mxu0 %v3413_v2  ;;  %v3275_v12 = vld [vmem:[%s3625_s1] sm:$0xff]   ;;  %v3276_v13 = vld [vmem:[%s3625_s1 + $0x10] sm:$0xff]   ;;  %v3277_v14 = vld [vmem:[%s3625_s1 + $0x8] sm:$0xff]   ;;  %s4117_s21 = sld [smem:[#allocation33_spill]] }
  0x5c   : > { %3014 = vmatprep.subr.bf16.mxu1 %v3413_v2  ;;  %3016 = vmatprep.mubr.msk.bf16.mxu1 %vm3414_vm1, %v3413_v2  ;;  %v3278_v15 = vld [vmem:[%s3625_s1 + $0x18] sm:$0xff]   ;;  %v3279_v16 = vld [vmem:[%s3625_s1 + $0x20] sm:$0xff]   ;;  %v3280_v17 = vld [vmem:[%s3625_s1 + $0x30] sm:$0xff]  }
  0x5d   : > { %v3281_v18 = vld [vmem:[%s3625_s1 + $0x28] sm:$0xff]   ;;  %v3282_v19 = vld [vmem:[%s3625_s1 + $0x38] sm:$0xff]   ;;  %v3283_v20 = vld [vmem:[%s3635_s16] sm:$0xff]   ;;  %s4113_s1 = sld [smem:[#allocation31_spill]] }
  0x5e   : > { %3007 = vmatpush3.bf16.msra.mxu0 %v3269_v4  ;;  %v3284_v21 = vld [vmem:[%s3635_s16 + $0x10] sm:$0xff]   ;;  %v3285_v22 = vld [vmem:[%s3635_s16 + $0x8] sm:$0xff]   ;;  %v3286_v23 = vld [vmem:[%s3635_s16 + $0x18] sm:$0xff]  }
  0x5f   : > { %3015 = vmatpush3.bf16.msra.mxu1 %v3270_v5  ;;  %3020 = vmatprep.subr.bf16.mxu0 %v3413_v2  ;;  %v3287_v24 = vld [vmem:[%s3635_s16 + $0x20] sm:$0xff]   ;;  %v3288_v25 = vld [vmem:[%s3635_s16 + $0x30] sm:$0xff]   ;;  %v3289_v26 = vld [vmem:[%s3635_s16 + $0x28] sm:$0xff]  }
  0x60   : > { %3028 = vmatprep.subr.bf16.mxu1 %v3413_v2  ;;  %v3290_v27 = vld [vmem:[%s3635_s16 + $0x38] sm:$0xff]   ;;  %v2867_v44 = vld [vmem:[%s3630_s29] ss:$0 sm:$0xff]  ;;  %v2868_v45 = vld [vmem:[%s3630_s29 + $0x1] ss:$0 sm:$0xff]  ;;  %s4110_s19 = scalar_lea.vmem %s4109_s13, %s4108_s9  ;;  %s4126_s16 = sld [smem:[#allocation40_spill]] }
  0x61   : > { %3009 = vmatmul.mubr.msk.bf16.vlgmr.msra.gmra.mrb[0].mxu0 %vm979_vm2, %v3708_v7  ;;  %v2851_v56 = vld [vmem:[%s3620_s23] ss:$0 sm:$0xff]  ;;  %v2852_v59 = vld [vmem:[%s3620_s23 + $0x1] ss:$0 sm:$0xff]  ;;  %v2869_v62 = vld [vmem:[%s3630_s29 + $0x2] ss:$0 sm:$0xff]  ;;  %s4118_s6 = scalar_lea.vmem %s4117_s21, %s3595_s26 }
  0x62   : > { %3017 = vmatmul.mubr.msk.bf16.vlgmr.msra.gmra.mrb[0].mxu1 %vm979_vm2, %v3708_v7  ;;  %3021 = vmatpush3.bf16.msra.mxu0 %v3271_v8  ;;  %v2870_v0 = vld [vmem:[%s3630_s29 + $0x3] ss:$0 sm:$0xff] }
  0x63   : > { %3029 = vmatpush3.bf16.msra.mxu1 %v3272_v9  ;;  %3022 = vmatprep.subr.bf16.mxu0 %v3413_v2  ;;  %s4114_s29 = scalar_lea.vmem %s4113_s1, %s3595_s26 }
  0x64   : > { %3030 = vmatprep.subr.bf16.mxu1 %v3413_v2  ;;  %3024 = vmatprep.mubr.msk.bf16.mxu0 %vm3414_vm1, %v3413_v2 }
  0x65   : > { %3032 = vmatprep.mubr.msk.bf16.mxu1 %vm3414_vm1, %v3413_v2 }
  0x66   : > { %3023 = vmatpush3.bf16.msra.mxu0 %v3273_v10 }
  0x67   : > { %3031 = vmatpush3.bf16.msra.mxu1 %v3274_v11  ;;  %3036 = vmatprep.subr.bf16.mxu0 %v3413_v2 }
  0x68   : > { %3044 = vmatprep.subr.bf16.mxu1 %v3413_v2 }
  0x69   : > { %3025 = vmatmul.mubr.msk.bf16.vlgmr.msra.gmra.mrb[4].mxu0 %vm979_vm2, %v3708_v7 }
  0x6a   : > { %3033 = vmatmul.mubr.msk.bf16.vlgmr.msra.gmra.mrb[4].mxu1 %vm979_vm2, %v3708_v7  ;;  %3037 = vmatpush3.bf16.msra.mxu0 %v3275_v12 }
  0x6b   : > { %3045 = vmatpush3.bf16.msra.mxu1 %v3276_v13  ;;  %3038 = vmatprep.subr.bf16.mxu0 %v3413_v2 }
  0x6c   : > { %3046 = vmatprep.subr.bf16.mxu1 %v3413_v2  ;;  %3040 = vmatprep.mubr.msk.bf16.mxu0 %vm3414_vm1, %v3413_v2 }
  0x6d   : > { %3048 = vmatprep.mubr.msk.bf16.mxu1 %vm3414_vm1, %v3413_v2 }
  0x6e   : > { %3039 = vmatpush3.bf16.msra.mxu0 %v3277_v14 }
  0x6f   : > { %3047 = vmatpush3.bf16.msra.mxu1 %v3278_v15  ;;  %3052 = vmatprep.subr.bf16.mxu0 %v3413_v2 }
  0x70   : > { %3060 = vmatprep.subr.bf16.mxu1 %v3413_v2 }
  0x71   : > { %3041 = vmatmul.mubr.msk.bf16.vlgmr.msra.gmra.mrb[8].mxu0 %vm979_vm2, %v3708_v7 }
  0x72   : > { %3049 = vmatmul.mubr.msk.bf16.vlgmr.msra.gmra.mrb[8].mxu1 %vm979_vm2, %v3708_v7  ;;  %3053 = vmatpush3.bf16.msra.mxu0 %v3279_v16  ;;  %v2853_v16 = vld [vmem:[%s3620_s23 + $0x2] ss:$0 sm:$0xff] }
  0x73   : > { %3061 = vmatpush3.bf16.msra.mxu1 %v3280_v17  ;;  %3054 = vmatprep.subr.bf16.mxu0 %v3413_v2 }
  0x74   : > { %3062 = vmatprep.subr.bf16.mxu1 %v3413_v2  ;;  %3056 = vmatprep.mubr.msk.bf16.mxu0 %vm3414_vm1, %v3413_v2 }
  0x75   : > { %3064 = vmatprep.mubr.msk.bf16.mxu1 %vm3414_vm1, %v3413_v2 }
  0x76   : > { %3055 = vmatpush3.bf16.msra.mxu0 %v3281_v18 }
  0x77   : > { %3063 = vmatpush3.bf16.msra.mxu1 %v3282_v19  ;;  %3068 = vmatprep.subr.bf16.mxu0 %v3413_v2  ;;  %v2854_v19 = vld [vmem:[%s3620_s23 + $0x3] ss:$0 sm:$0xff]  ;;  %s2565_s23 = sshll.u32 %s3687_s28, 4  ;;  %s3958_s23 = int_to_ptr.vmem [resolvable:$true] %s2565_s23 }
  0x78   : > { %3076 = vmatprep.subr.bf16.mxu1 %v3413_v2 }
  0x79   : > { %3057 = vmatmul.mubr.msk.bf16.vlgmr.msra.gmra.mrb[12].mxu0 %vm979_vm2, %v3708_v7 }
  0x7a   : > { %3065 = vmatmul.mubr.msk.bf16.vlgmr.msra.gmra.mrb[12].mxu1 %vm979_vm2, %v3708_v7  ;;  %3069 = vmatpush3.bf16.msra.mxu0 %v3283_v20 }
  0x7b   : > { %3070 = vmatprep.subr.bf16.mxu0 %v3413_v2  ;;  %3072 = vmatprep.mubr.msk.bf16.mxu0 %vm3414_vm1, %v3413_v2 }
  0x7c   : > { %3080 = vmatprep.mubr.msk.bf16.mxu1 %vm3414_vm1, %v3413_v2  ;;  %3077 = vmatpush3.bf16.msra.mxu1 %v3284_v21 }
  0x7d   : > { %3078 = vmatprep.subr.bf16.mxu1 %v3413_v2 }
  0x7e   : > { %3071 = vmatpush3.bf16.msra.mxu0 %v3285_v22 }
  0x7f   : > { %3084 = vmatprep.subr.bf16.mxu0 %v3413_v2 }
  0x80   : > { %3079 = vmatpush3.bf16.msra.mxu1 %v3286_v23 }
  0x81   : > { %3073 = vmatmul.mubr.msk.bf16.vlgmr.msra.gmra.mrb[16].mxu0 %vm979_vm2, %v3708_v7  ;;  %3092 = vmatprep.subr.bf16.mxu1 %v3413_v2 }
  0x82   : > { %3088 = vmatprep.mubr.msk.bf16.mxu0 %vm3414_vm1, %v3413_v2  ;;  %3085 = vmatpush3.bf16.msra.mxu0 %v3287_v24 }
  0x83   : > { %3081 = vmatmul.mubr.msk.bf16.vlgmr.msra.gmra.mrb[16].mxu1 %vm979_vm2, %v3708_v7  ;;  %3086 = vmatprep.subr.bf16.mxu0 %v3413_v2 }
  0x84   : > { %3093 = vmatpush3.bf16.msra.mxu1 %v3288_v25  ;;  %3096 = vmatprep.mubr.msk.bf16.mxu1 %vm3414_vm1, %v3413_v2 }
  0x85   : > { %3094 = vmatprep.subr.bf16.mxu1 %v3413_v2 }
  0x86   : > { %3087 = vmatpush3.bf16.msra.mxu0 %v3289_v26  ;;  %v2883_v26 = vld [vmem:[%s3640_s20] ss:$0 sm:$0xff] }
  0x87   : > { %3100 = vmatprep.subr.bf16.mxu0 %v3413_v2 }
  0x88   : > { %3095 = vmatpush3.bf16.msra.mxu1 %v3290_v27 }
  0x89   : > { %3106 = vmatprep.subr.bf16.mxu1 %v3413_v2  ;;  %3089 = vmatmul.mubr.msk.bf16.vlgmr.msra.gmra.mrb[20].mxu0 %vm979_vm2, %v3708_v7 }
  0x8a   : > { %3102 = vmatprep.mubr.msk.bf16.mxu0 %vm3414_vm1, %v3413_v2 }
  0x8b   : > { %3097 = vmatmul.mubr.msk.bf16.vlgmr.msra.gmra.mrb[20].mxu1 %vm979_vm2, %v3708_v7 }
  0x8c   : > { %3108 = vmatprep.mubr.msk.bf16.mxu1 %vm3414_vm1, %v3413_v2 }
 0x134   : > { %v1017_v28 = vpop.f32.mrb[0].mxu0 }
 0x135   : > { %v3010_v29 = vpop.f32.mrb[1].mxu0  ;;  %v1069_v30 = vpop.f32.mrb[0].mxu1  ;;  %v1018_v63 = vadd.f32 %v2851_v56, %v1017_v28  ;;  %v2884_v28 = vld [vmem:[%s3640_s20 + $0x1] ss:$0 sm:$0xff] }
 0x136   : > { %v1020_v31 = vpop.f32.mrb[2].mxu0  ;;  %v3018_v32 = vpop.f32.mrb[1].mxu1  ;;  %v1070_v1 = vadd.f32 %v2852_v59, %v1069_v30 }
 0x137   : > { %v3011_v33 = vpop.f32.mrb[3].mxu0  ;;  %v1072_v34 = vpop.f32.mrb[2].mxu1  ;;  %v1683_v11 = vpack.c.bf16 %v1018_v63, %v1018_v63 }
 0x138   : > { %v3019_v35 = vpop.f32.mrb[3].mxu1  ;;  %v1684_v15 = vpack.c.bf16 %v1070_v1, %v1070_v1 }
 0x13c   : > { %v1121_v36 = vpop.f32.mrb[4].mxu0 }
 0x13d   : > { %v3026_v37 = vpop.f32.mrb[5].mxu0  ;;  %v1173_v38 = vpop.f32.mrb[4].mxu1  ;;  %v1122_v22 = vadd.f32 %v2853_v16, %v1121_v36 }
 0x13e   : > { %v1124_v39 = vpop.f32.mrb[6].mxu0  ;;  %v3034_v40 = vpop.f32.mrb[5].mxu1  ;;  %v1174_v23 = vadd.f32 %v2854_v19, %v1173_v38 }
 0x13f   : > { %v3027_v41 = vpop.f32.mrb[7].mxu0  ;;  %v1176_v42 = vpop.f32.mrb[6].mxu1  ;;  %v1685_v24 = vpack.c.bf16 %v1122_v22, %v1122_v22 }
 0x140   : > { %v3035_v43 = vpop.f32.mrb[7].mxu1  ;;  %v1686_v25 = vpack.c.bf16 %v1174_v23, %v1174_v23 }
 0x144   : > { %v1269_v46 = vpop.f32.mrb[8].mxu0 }
 0x145   : > { %v1270_v47 = vadd.f32 %v2867_v44, %v1269_v46  ;;  %v1321_v48 = vpop.f32.mrb[8].mxu1  ;;  %v3042_v49 = vpop.f32.mrb[9].mxu0 }
 0x146   : > { %v1322_v50 = vadd.f32 %v2868_v45, %v1321_v48  ;;  %v1272_v51 = vpop.f32.mrb[10].mxu0  ;;  %v3050_v52 = vpop.f32.mrb[9].mxu1 }
 0x147   : > { %v1687_v53 = vpack.c.bf16 %v1270_v47, %v1270_v47  ;;  %v3043_v54 = vpop.f32.mrb[11].mxu0  ;;  %v1324_v55 = vpop.f32.mrb[10].mxu1  ;;  %v920_v52 = vld [vmem:[%s4110_s19] sm:$0x1] }
 0x148   : > { %v1688_v57 = vpack.c.bf16 %v1322_v50, %v1322_v50  ;;  %v3051_v58 = vpop.f32.mrb[11].mxu1  ;;  %v1881_v50 = vlaneseq }
 0x149   : > { %v1700_v60 = vsel %vm1695_vm3, %v1687_v53, 0  ;;  %v921_v53 = vmul.f32 1e+09, %v920_v52 }
 0x14a   : > { %v1746_v61 = vsel %vm1695_vm3, %v1688_v57, 0  ;;  %3101 = vmatpush3.bf16.xpose.msra.mxu0 %v1700_v60  ;;  %v1882_v51 = vshrl.u32 %v1881_v50, 7 }
 0x14b   : > { %3107 = vmatpush3.bf16.xpose.msra.mxu1 %v1746_v61  ;;  %3112 = vmatprep.subr.bf16.mxu0 %v3413_v2 }
 0x14c   : > { %v1373_v3 = vpop.f32.mrb[12].mxu0  ;;  %3118 = vmatprep.subr.bf16.mxu1 %v3413_v2  ;;  %v1883_v54 = vsub.s32 0, %v1882_v51 }
 0x14d   : > { %v1374_v4 = vadd.f32 %v2869_v62, %v1373_v3  ;;  %v1425_v5 = vpop.f32.mrb[12].mxu1  ;;  %v3058_v7 = vpop.f32.mrb[13].mxu0 }
 0x14e   : > { %v1426_v8 = vadd.f32 %v2870_v0, %v1425_v5  ;;  %v1376_v9 = vpop.f32.mrb[14].mxu0  ;;  %v3066_v10 = vpop.f32.mrb[13].mxu1  ;;  %v1884_v55 = vrot.slane %v921_v53, %v1883_v54 }
 0x14f   : > { %v1689_v12 = vpack.c.bf16 %v1374_v4, %v1374_v4  ;;  %v3059_v13 = vpop.f32.mrb[15].mxu0  ;;  %v1428_v14 = vpop.f32.mrb[14].mxu1 }
 0x150   : > { %v1690_v17 = vpack.c.bf16 %v1426_v8, %v1426_v8  ;;  %v3067_v18 = vpop.f32.mrb[15].mxu1 }
 0x151   : > { %v1792_v20 = vsel %vm1695_vm3, %v1689_v12, 0  ;;  %3103 = vmatmul.mubr.msk.bf16.vlgmr.msra.gmra.mrb[24].mxu0 %vm1695_vm3, %v1683_v11 }
 0x152   : > { %v1838_v21 = vsel %vm1695_vm3, %v1690_v17, 0  ;;  %3109 = vmatmul.mubr.msk.bf16.vlgmr.msra.gmra.mrb[24].mxu1 %vm1695_vm3, %v1684_v15  ;;  %3113 = vmatpush3.bf16.xpose.msra.mxu0 %v1792_v20 }
 0x153   : > { %3119 = vmatpush3.bf16.xpose.msra.mxu1 %v1838_v21  ;;  %3114 = vmatprep.mubr.msk.bf16.mxu0 %vm3414_vm1, %v3413_v2 }
 0x154   : > { %3120 = vmatprep.mubr.msk.bf16.mxu1 %vm3414_vm1, %v3413_v2  ;;  %3124 = vmatprep.subr.bf16.mxu0 %v3413_v2  ;;  %v1521_v27 = vpop.f32.mrb[16].mxu0 }
 0x155   : > { %3130 = vmatprep.subr.bf16.mxu1 %v3413_v2  ;;  %v1522_v29 = vadd.f32 %v2883_v26, %v1521_v27  ;;  %v3074_v30 = vpop.f32.mrb[17].mxu0 }
 0x156   : > { %v1524_v31 = vpop.f32.mrb[18].mxu0  ;;  %v1573_v32 = vpop.f32.mrb[16].mxu1 }
 0x157   : > { %v1691_v33 = vpack.c.bf16 %v1522_v29, %v1522_v29  ;;  %v3075_v34 = vpop.f32.mrb[19].mxu0  ;;  %v1574_v35 = vadd.f32 %v2884_v28, %v1573_v32  ;;  %v3082_v36 = vpop.f32.mrb[17].mxu1 }
 0x158   : > { %v1576_v37 = vpop.f32.mrb[18].mxu1 }
 0x159   : > { %3115 = vmatmul.mubr.msk.bf16.vlgmr.msra.gmra.mrb[28].mxu0 %vm1695_vm3, %v1685_v24  ;;  %v1943_v38 = vsel %vm1941_vm4, %v1691_v33, 0  ;;  %v1692_v39 = vpack.c.bf16 %v1574_v35, %v1574_v35  ;;  %v3083_v40 = vpop.f32.mrb[19].mxu1 }
 0x15a   : > { %3121 = vmatmul.mubr.msk.bf16.vlgmr.msra.gmra.mrb[28].mxu1 %vm1695_vm3, %v1686_v25  ;;  %3126 = vmatprep.mubr.msk.bf16.mxu0 %vm3414_vm1, %v3413_v2  ;;  %v2885_v40 = vld [vmem:[%s3640_s20 + $0x2] ss:$0 sm:$0xff] }
 0x15b   : > { %3132 = vmatprep.mubr.msk.bf16.mxu1 %vm3414_vm1, %v3413_v2  ;;  %3125 = vmatpush3.bf16.msra.mxu0 %v1943_v38  ;;  %v1989_v41 = vsel %vm1941_vm4, %v1692_v39, 0 }
 0x15c   : > { %3136 = vmatprep.subr.bf16.mxu0 %v3413_v2  ;;  %3131 = vmatpush3.bf16.msra.mxu1 %v1989_v41  ;;  %v3834_v42 = vpop.f32.mrb[20].mxu0 }
 0x15d   : > { %3142 = vmatprep.subr.bf16.mxu1 %v3413_v2  ;;  %v3090_v44 = vpop.f32.mrb[21].mxu0  ;;  %v1626_v41 = vadd.f32 %v2885_v40, %v3834_v42 }
 0x15e   : > { %v3836_v43 = vpop.f32.mrb[20].mxu1  ;;  %v1628_v46 = vpop.f32.mrb[22].mxu0 }
 0x15f   : > { %v3098_v45 = vpop.f32.mrb[21].mxu1  ;;  %v3091_v48 = vpop.f32.mrb[23].mxu0 }
 0x160   : > { %v1680_v47 = vpop.f32.mrb[22].mxu1  ;;  %v2886_v45 = vld [vmem:[%s3640_s20 + $0x3] ss:$0 sm:$0xff]  ;;  %s4112_s20 = sld [smem:[#allocation19_spill]] }
 0x161   : > { %v3099_v49 = vpop.f32.mrb[23].mxu1  ;;  %v1693_v47 = vpack.c.bf16 %v1626_v41, %v1626_v41  ;;  %v1678_v48 = vadd.f32 %v2886_v45, %v3836_v43  ;;  %v2127_v43 = vld [vmem:[%s4111_s22] sm:$0xf] }
 0x163   : > { %v2035_v53 = vsel %vm1941_vm4, %v1693_v47, 0  ;;  %v1694_v54 = vpack.c.bf16 %v1678_v48, %v1678_v48 }
 0x224   : > { %v1736_v56 = vpop.f32.mrb[24].mxu0 }
 0x225   : > { %v1886_v57 = vsub.f32 %v1736_v56, %v1884_v55  ;;  %v1782_v58 = vpop.f32.mrb[24].mxu1  ;;  %v3104_v59 = vpop.f32.mrb[25].mxu0 }
 0x226   : > { %v3110_v60 = vpop.f32.mrb[25].mxu1  ;;  %v1739_v61 = vpop.f32.mrb[26].mxu0  ;;  %v1887_v62 = vsub.f32 %v1782_v58, %v1884_v55 }
 0x227   : > { %v1785_v63 = vpop.f32.mrb[26].mxu1  ;;  %v3105_v0 = vpop.f32.mrb[27].mxu0  ;;  %v1890_v1 = vsel %vm1695_vm3, %v1886_v57, -inf  ;;  %v2135_v60 = vsel %vm1941_vm4, %v2127_v43, 0  ;;  %v3415_v43 = vmov 0  }
 0x228   : > { %v3111_v3 = vpop.f32.mrb[27].mxu1  ;;  %1891 = vmax.xlane.f32.xlu0 %v1890_v1  ;;  %v1893_v4 = vsel %vm1695_vm3, %v1887_v62, -inf  ;;  %v2128_v0 = vld [vmem:[%s4111_s22 + $0x4] sm:$0xf] }
 0x229   : > { %v2181_v1 = vsel %vm1941_vm4, %v2128_v0, 0  ;;  %v2129_v3 = vld [vmem:[%s4111_s22 + $0x8] sm:$0xf]  ;;  %3266 = vset.pattern.permute.xlu0 %v3415_v43 }
 0x22a   : > { %v3294_v0 = vld [vmem:[%s3673_s27 + $0x8] sm:$0xff]  }
 0x22c   : > { %1894 = vmax.xlane.f32.xlu0 %v1893_v4  ;;  %v1828_v5 = vpop.f32.mrb[28].mxu0 }
 0x22d   : > { %v1874_v7 = vpop.f32.mrb[28].mxu1  ;;  %v1888_v8 = vsub.f32 %v1828_v5, %v1884_v55  ;;  %v3116_v9 = vpop.f32.mrb[29].mxu0 }
 0x22e   : > { %v3122_v10 = vpop.f32.mrb[29].mxu1  ;;  %v1831_v11 = vpop.f32.mrb[30].mxu0  ;;  %v1889_v12 = vsub.f32 %v1874_v7, %v1884_v55 }
 0x22f   : > { %v1877_v13 = vpop.f32.mrb[30].mxu1  ;;  %v3117_v14 = vpop.f32.mrb[31].mxu0  ;;  %v1896_v15 = vsel %vm1695_vm3, %v1888_v8, -inf  ;;  %v2130_v10 = vld [vmem:[%s4111_s22 + $0xc] sm:$0xf] }
 0x230   : > { %v3123_v16 = vpop.f32.mrb[31].mxu1  ;;  %1897 = vmax.xlane.f32.xlu1 %v1896_v15  ;;  %v1899_v17 = vsel %vm1695_vm3, %v1889_v12, -inf  ;;  %v2273_v15 = vsel %vm1941_vm4, %v2130_v10, 0 }
 0x234   : > { %1900 = vmax.xlane.f32.xlu1 %v1899_v17 }
 0x2b5   : > { %v1892_v18 = vpop.xlane.xlu0 %1891 }
 0x2b6   : > { %v1902_v19 = vsub.f32 %v1886_v57, %v1892_v18  ;;  %v2081_v57 = vsel %vm1941_vm4, %v1694_v54, 0 }
 0x2b8   : > { %v1906_v20 = vmul.f32 1.442695, %v1902_v19 }
 0x2b9   : > { %v1895_v21 = vpop.xlane.xlu0 %1894 }
 0x2ba   : > { %3297 = vpow2.f32 %v1906_v20  ;;  %v1903_v22 = vsub.f32 %v1887_v62, %v1895_v21 }
 0x2bc   : > { %v1908_v23 = vmul.f32 1.442695, %v1903_v22 }
 0x2bd   : > { %v1898_v24 = vpop.xlane.xlu1 %1897 }
 0x2be   : > { %3299 = vpow2.f32 %v1908_v23  ;;  %v1904_v25 = vsub.f32 %v1888_v8, %v1898_v24  ;;  %v2227_v8 = vsel %vm1941_vm4, %v2129_v3, 0 }
 0x2c0   : > { %v1910_v26 = vmul.f32 1.442695, %v1904_v25 }
 0x2c1   : > { %v1901_v27 = vpop.xlane.xlu1 %1900 }
 0x2c2   : > { %3301 = vpow2.f32 %v1910_v26  ;;  %v1905_v28 = vsub.f32 %v1889_v12, %v1901_v27 }
 0x2c4   : > { %v3298_v29 = vpop.eup %3297  ;;  %v1912_v30 = vmul.f32 1.442695, %v1905_v28 }
 0x2c5   : > { %v1914_v31 = vsel %vm1695_vm3, %v3298_v29, 0.0 }
 0x2c6   : > { %3303 = vpow2.f32 %v1912_v30  ;;  %1915 = vadd.xlane.f32.xlu0 %v1914_v31 }
 0x2c8   : > { %v3300_v32 = vpop.eup %3299 }
 0x2c9   : > { %v1917_v33 = vsel %vm1695_vm3, %v3300_v32, 0.0 }
 0x2ca   : > { %1918 = vadd.xlane.f32.xlu1 %v1917_v33 }
 0x2cc   : > { %v3302_v34 = vpop.eup %3301 }
 0x2cd   : > { %v1920_v35 = vsel %vm1695_vm3, %v3302_v34, 0.0 }
 0x2ce   : > { %1921 = vadd.xlane.f32.xlu0 %v1920_v35 }
 0x2d0   : > { %v3304_v36 = vpop.eup %3303 }
 0x2d1   : > { %v1923_v37 = vsel %vm1695_vm3, %v3304_v36, 0.0 }
 0x2d2   : > { %1924 = vadd.xlane.f32.xlu1 %v1923_v37 }
 0x353   : > { %v1916_v38 = vpop.xlane.xlu0 %1915 }
 0x354   : > { %3305 = vrcp.f32 %v1916_v38 }
 0x357   : > { %v1919_v39 = vpop.xlane.xlu1 %1918 }
 0x358   : > { %3307 = vrcp.f32 %v1919_v39 }
 0x35b   : > { %v1922_v44 = vpop.xlane.xlu0 %1921 }
 0x35c   : > { %3309 = vrcp.f32 %v1922_v44 }
 0x35e   : > { %v3306_v46 = vpop.eup %3305 }
 0x35f   : > { %v1930_v49 = vmul.f32 %v3306_v46, %v3298_v29  ;;  %v1925_v50 = vpop.xlane.xlu1 %1924 }
 0x360   : > { %3311 = vrcp.f32 %v1925_v50 }
 0x361   : > { %v1934_v51 = vpack.c.bf16 %v1930_v49, %v1930_v49  ;;  %v2911_v49 = vld [vmem:[%s4114_s29] ss:$0 sm:$0xff] }
 0x362   : > { %v3308_v52 = vpop.eup %3307 }
 0x363   : > { %v1931_v55 = vmul.f32 %v3308_v52, %v3300_v32  ;;  %3127 = vmatmul.mubr.msk.bf16.vlgmr.msra.gmra.mrb[32].mxu0 %vm1695_vm3, %v1934_v51 }
 0x364   : > { %3137 = vmatpush3.bf16.msra.mxu0 %v2035_v53  ;;  %3138 = vmatprep.mubr.msk.bf16.mxu0 %vm3414_vm1, %v3413_v2 }
 0x365   : > { %v1935_v42 = vpack.c.bf16 %v1931_v55, %v1931_v55  ;;  %3148 = vmatprep.subr.bf16.mxu0 %v3413_v2 }
 0x366   : > { %v3310_v56 = vpop.eup %3309 }
 0x367   : > { %v1932_v58 = vmul.f32 %v3310_v56, %v3302_v34  ;;  %3133 = vmatmul.mubr.msk.bf16.vlgmr.msra.gmra.mrb[32].mxu1 %vm1695_vm3, %v1935_v42  ;;  %v919_v56 = vld [vmem:[%s4112_s20] sm:$0xff] }
 0x368   : > { %3143 = vmatpush3.bf16.msra.mxu1 %v2081_v57  ;;  %3144 = vmatprep.mubr.msk.bf16.mxu1 %vm3414_vm1, %v3413_v2 }
 0x369   : > { %v1936_v59 = vpack.c.bf16 %v1932_v58, %v1932_v58  ;;  %3154 = vmatprep.subr.bf16.mxu1 %v3413_v2 }
 0x36a   : > { %v3312_v61 = vpop.eup %3311 }
 0x36b   : > { %v1933_v62 = vmul.f32 %v3312_v61, %v3304_v36  ;;  %3139 = vmatmul.mubr.msk.bf16.vlgmr.msra.gmra.mrb[36].mxu0 %vm1695_vm3, %v1936_v59 }
 0x36c   : > { %3149 = vmatpush3.bf16.msra.mxu0 %v2135_v60  ;;  %3150 = vmatprep.mubr.msk.bf16.mxu0 %vm3414_vm1, %v3413_v2 }
 0x36d   : > { %v1937_v63 = vpack.c.bf16 %v1933_v62, %v1933_v62  ;;  %3160 = vmatprep.subr.bf16.mxu0 %v3413_v2  ;;  %v3291_v62 = vld [vmem:[%s3663_s7] sm:$0xff]  }
 0x36f   : > { %3145 = vmatmul.mubr.msk.bf16.vlgmr.msra.gmra.mrb[36].mxu1 %vm1695_vm3, %v1937_v63  ;;  %v3293_v63 = vld [vmem:[%s3673_s27] sm:$0xff]  }
 0x370   : > { %3156 = vmatprep.mubr.msk.bf16.mxu1 %vm3414_vm1, %v3413_v2  ;;  %3155 = vmatpush3.bf16.msra.mxu1 %v2181_v1 }
 0x371   : > { %3166 = vmatprep.subr.bf16.mxu1 %v3413_v2 }
 0x436   : > { %v1979_v4 = vpop.f32.mrb[32].mxu0 }
 0x437   : > { %v2123_v5 = vpack.c.bf16 %v1979_v4, %v1979_v4  ;;  %v3128_v7 = vpop.f32.mrb[33].mxu0 }
 0x438   : > { %v1982_v9 = vpop.f32.mrb[34].mxu0 }
 0x439   : > { %v3129_v11 = vpop.f32.mrb[35].mxu0  ;;  %3151 = vmatmul.mubr.msk.bf16.vlgmr.msra.gmra.mrb[40].mxu0 %vm1695_vm3, %v2123_v5  ;;  %v2913_v9 = vld [vmem:[%s4118_s6] ss:$0 sm:$0xff] }
 0x43a   : > { %v2025_v12 = vpop.f32.mrb[32].mxu1  ;;  %3161 = vmatpush3.bf16.msra.mxu0 %v2227_v8  ;;  %3162 = vmatprep.mubr.msk.bf16.mxu0 %vm3414_vm1, %v3413_v2 }
 0x43b   : > { %v2124_v13 = vpack.c.bf16 %v2025_v12, %v2025_v12  ;;  %v3134_v14 = vpop.f32.mrb[33].mxu1  ;;  %3172 = vmatprep.subr.bf16.mxu0 %v3413_v2 }
 0x43c   : > { %v2028_v16 = vpop.f32.mrb[34].mxu1 }
 0x43d   : > { %v3135_v17 = vpop.f32.mrb[35].mxu1  ;;  %3157 = vmatmul.mubr.msk.bf16.vlgmr.msra.gmra.mrb[40].mxu1 %vm1695_vm3, %v2124_v13  ;;  %v3296_v16 = vld [vmem:[%s3673_s27 + $0x18] sm:$0xff]  }
 0x43e   : > { %v2071_v18 = vpop.f32.mrb[36].mxu0  ;;  %3167 = vmatpush3.bf16.msra.mxu1 %v2273_v15  ;;  %3168 = vmatprep.mubr.msk.bf16.mxu1 %vm3414_vm1, %v3413_v2  ;;  %v3295_v15 = vld [vmem:[%s3673_s27 + $0x10] sm:$0xff]   ;;  %v2914_v17 = vld [vmem:[%s895_s8] ss:$0 sm:$0xff]  ;;  %s4121_s8 = sld [smem:[#allocation9_spill]]  ;;  %s4122_s27 = sld [smem:[#allocation6_spill]] }
 0x43f   : > { %v2125_v19 = vpack.c.bf16 %v2071_v18, %v2071_v18  ;;  %v3140_v20 = vpop.f32.mrb[37].mxu0  ;;  %3180 = vmatprep.subr.bf16.mxu1 %v3413_v2 }
 0x440   : > { %v2074_v21 = vpop.f32.mrb[38].mxu0 }
 0x441   : > { %v3141_v22 = vpop.f32.mrb[39].mxu0  ;;  %3163 = vmatmul.mubr.msk.bf16.vlgmr.msra.gmra.mrb[44].mxu0 %vm1695_vm3, %v2125_v19 }
 0x442   : > { %v2117_v23 = vpop.f32.mrb[36].mxu1  ;;  %3176 = vmatprep.mubr.msk.bf16.mxu0 %vm3414_vm1, %v3413_v2  ;;  %3173 = vmatpush3.bf16.msra.mxu0 %v3291_v62 }
 0x443   : > { %v2126_v24 = vpack.c.bf16 %v2117_v23, %v2117_v23  ;;  %v3146_v25 = vpop.f32.mrb[37].mxu1  ;;  %3174 = vmatprep.subr.bf16.mxu0 %v3413_v2 }
 0x444   : > { %v2120_v26 = vpop.f32.mrb[38].mxu1  ;;  %s2927_s2 = sshll.u32 %s4121_s8, 7 }
 0x445   : > { %v3147_v27 = vpop.f32.mrb[39].mxu1  ;;  %3169 = vmatmul.mubr.msk.bf16.vlgmr.msra.gmra.mrb[44].mxu1 %vm1695_vm3, %v2126_v24  ;;  %s3956_s18 = scalar_lea.hbm %s4126_s16, %s2927_s2 }
 0x446   : > { %3188 = vmatprep.mubr.msk.bf16.mxu1 %vm3414_vm1, %v3413_v2  ;;  %3181 = vmatpush3.bf16.msra.mxu1 %v3293_v63 }
 0x447   : > { %3182 = vmatprep.subr.bf16.mxu1 %v3413_v2 }
 0x44a   : > { %3183 = vmatpush3.bf16.msra.mxu1 %v3294_v0 }
 0x44b   : > { %3184 = vmatprep.subr.bf16.mxu1 %v3413_v2 }
 0x44e   : > { %3185 = vmatpush3.bf16.msra.mxu1 %v3295_v15 }
 0x44f   : > { %3186 = vmatprep.subr.bf16.mxu1 %v3413_v2  ;;  %v2918_v2 = vld [vmem:[%s903_s15] ss:$0 sm:$0xff] }
 0x452   : > { %3187 = vmatpush3.bf16.msra.mxu1 %v3296_v16 }
 0x50c   : > { %v2171_v28 = vpop.f32.mrb[40].mxu0 }
 0x50d   : > { %v3152_v29 = vpop.f32.mrb[41].mxu0  ;;  %v2315_v33 = vsel %vm979_vm2, %v2171_v28, 0.0 }
 0x50e   : > { %v2174_v30 = vpop.f32.mrb[42].mxu0 }
 0x50f   : > { %v3153_v31 = vpop.f32.mrb[43].mxu0 }
 0x510   : > { %v2217_v32 = vpop.f32.mrb[40].mxu1 }
 0x511   : > { %v2316_v34 = vsel %vm979_vm2, %v2217_v32, 0.0  ;;  %v3158_v35 = vpop.f32.mrb[41].mxu1 }
 0x512   : > { %v2317_v36 = vadd.f32 %v2316_v34, %v2315_v33  ;;  %v2220_v37 = vpop.f32.mrb[42].mxu1 }
 0x513   : > { %v3159_v38 = vpop.f32.mrb[43].mxu1 }
 0x514   : > { %v2263_v39 = vpop.f32.mrb[44].mxu0 }
 0x515   : > { %v2318_v40 = vsel %vm979_vm2, %v2263_v39, 0.0  ;;  %v3164_v41 = vpop.f32.mrb[45].mxu0 }
 0x516   : > { %v2319_v44 = vadd.f32 %v2318_v40, %v2317_v36  ;;  %v2266_v45 = vpop.f32.mrb[46].mxu0  ;;  %v2924_v41 = vld [vmem:[%s906_s17] ss:$0 sm:$0xff]  ;;  %s4127_s17 = sand.u32 1, %s4122_s27  }
 0x517   : > { %v3165_v46 = vpop.f32.mrb[47].mxu0  ;;  %v2925_v45 = vld [vmem:[%s909_s11] ss:$0 sm:$0xff]  ;;  %s3317_s11 = scalar_lea.vmem %s3958_s23, 128 }
 0x518   : > { %v2309_v47 = vpop.f32.mrb[44].mxu1  ;;  %p3318_p1 = scmp.ne.s32.totalorder %s3958_s23, %s3317_s11 }
 0x519   : > { %v2320_v48 = vsel %vm979_vm2, %v2309_v47, 0.0  ;;  %v3170_v50 = vpop.f32.mrb[45].mxu1 }
 0x51a   : > { %v2321_v51 = vadd.f32 %v2320_v48, %v2319_v44  ;;  %v2312_v52 = vpop.f32.mrb[46].mxu1  ;;  %p3319_p2 = pnand %p3318_p1, %p3566_p3 }
 0x51b   : > { %v3171_v53 = vpop.f32.mrb[47].mxu1 }
 0x51c   : > { %v2329_v54 = vadd.f32 %v2911_v49, %v2321_v51  ;;  %p3320_p4 = pneg %p3319_p2 }
 0x51e   : > { %v2330_v55 = vadd.f32 %v2329_v54, %v3704_v6  ;;  %v3292_v6 = vld [vmem:[%s3663_s7 + $0x8] sm:$0xff]   ;;  %s4115_s7 = sld [smem:[#allocation32_spill]] }
 0x51f   : > { %3175 = vmatpush3.bf16.msra.mxu0 %v3292_v6 }
 0x520   : > { %v2333_v42 = vsel %vm979_vm2, %v2330_v55, 0.0 }
 0x521   : > { %2334 = vadd.xlane.f32.xlu0 %v2333_v42 }
 0x524   : > { %s4116_s3 = scalar_lea.vmem %s4115_s7, %s3595_s26  ;;  %s2552_s26 = scalar_lea.sflag [#allocation3], %s4127_s17 }
 0x525   : > { %v2912_v7 = vld [vmem:[%s4116_s3] ss:$0 sm:$0xff]  ;;  %s3416_s7 = smov [#allocation2]  }
 0x526   : > { %s3321_s3 = sshll.u32 %s3416_s7, 4  ;;  %s3322_s3 = int_to_ptr.vmem [resolvable:$false] %s3321_s3 }
 0x527   : > { %s3323_s30 = scalar_lea.vmem %s3322_s3, 256  ;;  %p3324_p5 = scmp.lt.s32.totalorder %s3958_s23, %s3322_s3 }
 0x528   : > { %p3325_p6 = scmp.lt.s32.totalorder %s3323_s30, %s3317_s11 }
 0x52a   : > { %p3326_p7 = por %p3325_p6, %p3324_p5 }
 0x52c   : > { %p3327_p8 = pnand %p3326_p7, %p3320_p4 }
 0x537   : > { %2363 = vperm.xlu0 %3266, %v919_v56  }
 0x5ae   : > { %v2335_v57 = vpop.xlane.xlu0 %2334 }
 0x5af   : > { %v2337_v58 = vmul.f32 0.03125, %v2335_v57 }
 0x5b1   : > { %v2338_v59 = vsub.f32 %v2330_v55, %v2337_v58 }
 0x5b3   : > { %v2339_v60 = vmul.f32 %v2338_v59, %v2338_v59 }
 0x5b5   : > { %v2340_v61 = vsel %vm979_vm2, %v2339_v60, 0.0 }
 0x5b6   : > { %2341 = vadd.xlane.f32.xlu1 %v2340_v61  ;;  %v2364_v11 = vpop.permute.xlu0 %2363 }
 0x643   : > { %v2342_v1 = vpop.xlane.xlu1 %2341 }
 0x644   : > { %v2343_v3 = vmul.f32 0.03125, %v2342_v1 }
 0x646   : > { %v2344_v4 = vadd.f32 1e-05, %v2343_v3 }
 0x648   : > { %3313 = vrsqrt.f32 %v2344_v4 }
 0x652   : > { %v3314_v5 = vpop.eup %3313 }
 0x653   : > { %v2346_v8 = vmul.f32 %v3314_v5, %v2338_v59 }
 0x655   : > { %v2353_v10 = vmul.f32 %v2912_v7, %v2346_v8 }
 0x657   : > { %v2360_v12 = vadd.f32 %v2913_v9, %v2353_v10 }
 0x659   : > { %v2366_v13 = vmul.f32 %v2364_v11, %v2360_v12 }
 0x65b   : > { %v2367_v14 = vpack.c.bf16 %v2366_v13, %v2366_v13 }
 0x65d   : > { %3177 = vmatmul.mubr.msk.bf16.vlgmr.msra.gmra.mrb[48].mxu0 %vm979_vm2, %v2367_v14 }
 0x730   : > { %v2428_v18 = vpop.f32.mrb[48].mxu0 }
 0x731   : > { %v2429_v19 = vadd.f32 %v2914_v17, %v2428_v18  ;;  %v3178_v20 = vpop.f32.mrb[49].mxu0 }
 0x732   : > { %v2431_v21 = vpop.f32.mrb[50].mxu0 }
 0x733   : > { %v2434_v22 = vmax.f32 %v2429_v19, 0.0  ;;  %v3179_v23 = vpop.f32.mrb[51].mxu0 }
 0x735   : > { %v2435_v24 = vpack.c.bf16 %v2434_v22, %v2434_v22 }
 0x737   : > { %3189 = vmatmul.mubr.msk.bf16.vlgmr.msra.gmra.mrb[48].mxu1 %vm2475_vm5, %v2435_v24 }
 0x80a   : > { %v2513_v25 = vpop.f32.mrb[48].mxu1 }
 0x80b   : > { %v2514_v26 = vadd.f32 %v2918_v2, %v2513_v25  ;;  %v3190_v27 = vpop.f32.mrb[49].mxu1 }
 0x80c   : > { %v2516_v28 = vpop.f32.mrb[50].mxu1 }
 0x80d   : > { %v3191_v29 = vpop.f32.mrb[51].mxu1  ;;  %v2519_v30 = vadd.f32 %v2514_v26, %v2366_v13 }
 0x80f   : > { %v2522_v31 = vsel %vm979_vm2, %v2519_v30, 0.0 }
 0x810   : > { %2523 = vadd.xlane.f32.xlu1 %v2522_v31 }
 0x89d   : > { %v2524_v32 = vpop.xlane.xlu1 %2523 }
 0x89e   : > { %v2525_v33 = vmul.f32 0.03125, %v2524_v32 }
 0x8a0   : > { %v2526_v34 = vsub.f32 %v2519_v30, %v2525_v33 }
 0x8a2   : > { %v2527_v35 = vmul.f32 %v2526_v34, %v2526_v34 }
 0x8a4   : > { %v2528_v36 = vsel %vm979_vm2, %v2527_v35, 0.0 }
 0x8a5   : > { %2529 = vadd.xlane.f32.xlu1 %v2528_v36 }
 0x932   : > { %v2530_v37 = vpop.xlane.xlu1 %2529 }
 0x933   : > { %v2531_v38 = vmul.f32 0.03125, %v2530_v37 }
 0x935   : > { %v2532_v39 = vadd.f32 1e-05, %v2531_v38 }
 0x937   : > { %3315 = vrsqrt.f32 %v2532_v39 }
 0x941   : > { %v3316_v40 = vpop.eup %3315 }
 0x942   : > { %v2534_v44 = vmul.f32 %v3316_v40, %v2526_v34 }
 0x944   : > { %v2541_v46 = vmul.f32 %v2924_v41, %v2534_v44 }
 0x946   : > { %v2548_v47 = vadd.f32 %v2925_v45, %v2541_v46 }
 0x948   : > { %v2549_v48 = vmul.f32 %v2548_v47, %v2364_v11 }
 0x94a   : > { %2550 = vst.msk [vmem:[%s3687_s28] sm:$0xff] %vm979_vm2, %v2549_v48 }
 0x94b   : > { %3330 = shalt.err (!%p3327_p8)
}
 0x94c   : > { %s3331_s28 = scalar_lea.hbm %s3956_s18, 128  ;;  %s3335_s6 = scalar_lea.hbm %s4126_s16, 256 }
 0x94d   : > { %p3332_p10 = scmp.ne.s32.totalorder %s3956_s18, %s3331_s28  ;;  %p3336_p13 = scmp.lt.u32.totalorder %s3956_s18, %s4126_s16 }
 0x94e   : > { %p3337_p0 = scmp.lt.u32.totalorder %s3335_s6, %s3331_s28  ;;  %p3339_p2 = scmp.lt.u32.totalorder %s3331_s28, %s3956_s18 }
 0x94f   : > { %p3333_p11 = pnand %p3332_p10, %p3566_p3 }
 0x950   : > { %p3338_p1 = por %p3337_p0, %p3336_p13 }
 0x951   : > { %p3334_p12 = pneg %p3333_p11 }
 0x952   : > { %p3340_p4 = por %p3339_p2, %p3338_p1 }
 0x954   : > { %p3341_p5 = pnand %p3340_p4, %p3334_p12 }
 0x956   : > { %3344 = shalt.err (!%p3341_p5)
}
 0x957   : > { %3192 = dma.vmem_to_hbm [thread:$0]  (%p3566_p3), %s3958_s23, 128, %s3956_s18, %s2552_s26  }
 0x958 PF: > { %s4128_s4 = sld [smem:[#allocation12_spill]]  ;;  %s4129_s24 = sld [smem:[#allocation5_spill]] }
 0x95e   : > { %p3198_p6 = scmp.ge.s32.totalorder %s4128_s4, 2  ;;  %s2577_s9 = sand.u32 1, %s4129_s24  }
 0x95f   : > { %s2578_s8 = scalar_lea.sflag [#allocation3], %s2577_s9 }
 0x960   : > { %p3195_p7 = pnand %p3198_p6, %p3576_p9 }
 0x962   : > { %3378 = dma.done.wait (!%p3195_p7), %s2578_s8, 128  }
 0x963   : > { %3380 = vsyncadd (!%p3195_p7), %s2578_s8, 4294967168  ;;  %s32_s23 = sadd.s32 1, %s4128_s4   ;;  %s4131_s0 = sld [smem:[#allocation6_spill]] }
 0x964   : > { %p29_p8 = scmp.ge.s32.totalorder %s32_s23, 6   ;;  %s4132_s30 = sld [smem:[#allocation7_spill]] }
 0x965   : > { %s4133_s20 = sld [smem:[#allocation17_spill]]  ;;  %s4134_s21 = sld [smem:[#allocation10_spill]] }
 0x966   : > { %s4135_s1 = sld [smem:[#allocation11_spill]]  ;;  %s4136_s22 = sld [smem:[#allocation13_spill]] }
 0x967   : > { %s4137_s2 = sld [smem:[#allocation15_spill]]  ;;  %31 = sbr.rel (!%p29_p8) target bundleno = 26 (0x1a), region = 189 }
 0x96e   :  { %2583 = vsyncpa [#allocation3], 1 }
 0x96f   :  { %2585 = vsyncpa [#allocation3 + $0x1], 1 }

</bundles_post_ra>
